<compile_context>
chip_gen: v5e
topology: v5e:2x2
jax: 0.10.0
libtpu: 0.0.40
codegen_flags: <defaults>
</compile_context>

<pallas_src>
import functools

import jax
import jax.numpy as jnp
import numpy as np
from jax import lax
from jax.experimental import pallas as pl
from jax.experimental.pallas import tpu as pltpu

LANE = 128


def _pad_to(n, m=LANE):
    return ((n + m - 1) // m) * m


def _mm(a, b):
    # bf16 MXU operands, f32 accumulation (casts are no-ops if already bf16).
    return jnp.dot(a.astype(jnp.bfloat16), b.astype(jnp.bfloat16),
                   preferred_element_type=jnp.float32)


# ----------------------------------------------------------------------------
# Kernel: single invocation; batch folded into the matmul M dimension.
# ----------------------------------------------------------------------------
def wavenet_kernel(x_ref, cb_ref,
                   start_w_ref, start_b_ref,
                   dil_w_ref, so_w_ref, so_b_ref,
                   end1_w_ref, end1_b_ref,
                   end2_w_ref, end2_b_ref,
                   o_ref, *, layers, stacks, s_pad, seq_len):
    x = x_ref[...]                                         # (B*T, O_pad) bf16
    M = x.shape[0]

    # start_conv (kernel_size=1) == matmul
    h32 = _mm(x, start_w_ref[...]) + start_b_ref[...]      # (B*T, R_pad) f32
    skip_sum = jnp.zeros((M, s_pad), jnp.float32)

    # Batch-local causal masks, one per dilation level, hoisted out of the
    # stack loop (loop bodies don't CSE compares/broadcasts).  t = row % T.
    t_idx = lax.broadcasted_iota(jnp.int32, h32.shape, 0) % seq_len
    keep = tuple(t_idx >= (1 << l) for l in range(layers))

    def stack_body(stack, carry):
        h32, skip_sum = carry
        for layer in range(layers):                        # unrolled: d static
            d = 1 << layer
            nb = stack * layers + layer
            # Causal dilated conv (kernel_size=2):
            #   z[t] = W0 @ h[t-d] + W1 @ h[t] + bias,  h[t<0] == 0  (per batch)
            # Shift via XLU roll + hoisted mask (the roll wrap from the
            # previous batch element lands only on masked rows).
            h16 = h32.astype(jnp.bfloat16)
            h_prev = jnp.where(keep[layer],
                               pltpu.roll(h32, shift=d, axis=0),
                               0.0).astype(jnp.bfloat16)
            h_cat = jnp.concatenate([h_prev, h16], axis=1)  # (B*T, 2*R_pad) bf16
            # fused dilated conv + (precomputed) conditioning / conv biases
            z = _mm(h_cat, dil_w_ref[nb]) + cb_ref[nb]      # (B*T, 2*Gh_pad) f32
            gh = z.shape[1] // 2
            gate = (jnp.tanh(z[:, :gh])
                    * jax.nn.sigmoid(z[:, gh:])).astype(jnp.bfloat16)
            # fused skip + residual projections, then slice; accumulate in f32
            proj = _mm(gate, so_w_ref[nb]) + so_b_ref[nb]   # (B*T, S_pad+R_pad)
            skip_sum = skip_sum + proj[:, :s_pad]
            h32 = h32 + proj[:, s_pad:]
        return h32, skip_sum

    h32, skip_sum = lax.fori_loop(0, stacks, stack_body, (h32, skip_sum))

    y = jnp.maximum(skip_sum, 0.0)
    y = jnp.maximum(_mm(y, end1_w_ref[...]) + end1_b_ref[...], 0.0)
    y = _mm(y, end2_w_ref[...]) + end2_b_ref[...]           # (B*T, O_pad) f32
    o_ref[...] = y.astype(o_ref.dtype)                      # bf16 writeback


# ----------------------------------------------------------------------------
# Wrapper: weight fusion / lane padding / conditioning hoist (glue, done once).
# ----------------------------------------------------------------------------
def _prep_weights(p):
    O, R = p["start_w"].shape
    NB, _, _, G = p["dil_w"].shape
    Gh = G // 2
    S = p["skip_w"].shape[-1]
    Rp, Ghp, Sp, Op = _pad_to(R), _pad_to(Gh), _pad_to(S), _pad_to(O)

    def pad2(a, r, c):           # zero-pad last two dims to (r, c)
        pads = [(0, 0)] * (a.ndim - 2) + [(0, r - a.shape[-2]),
                                          (0, c - a.shape[-1])]
        return jnp.pad(a, pads)

    # dilated conv weight: (NB, 2, R, G) -> (NB, 2*Rp, 2*Ghp)
    # input layout  [h_prev | h], output layout [filter | gate] (each padded).
    def split_out(w):            # (NB, R, G) -> (NB, Rp, 2*Ghp)
        return jnp.concatenate([pad2(w[..., :Gh], Rp, Ghp),
                                pad2(w[..., Gh:], Rp, Ghp)], axis=-1)
    dil_w = jnp.concatenate([split_out(p["dil_w"][:, 0]),
                             split_out(p["dil_w"][:, 1])], axis=1)

    # fused skip | residual projection
    so_w = jnp.concatenate([pad2(p["skip_w"], Ghp, Sp),
                            pad2(p["out_w"], Ghp, Rp)], axis=-1)
    so_b = jnp.concatenate([pad2(p["skip_b"], 1, Sp),
                            pad2(p["out_b"], 1, Rp)], axis=-1)

    w = dict(
        start_w=pad2(p["start_w"], Op, Rp).astype(jnp.bfloat16),
        start_b=pad2(p["start_b"], 1, Rp),
        dil_w=dil_w.astype(jnp.bfloat16),
        so_w=so_w.astype(jnp.bfloat16),
        so_b=so_b,
        end1_w=pad2(p["end1_w"], Sp, Sp).astype(jnp.bfloat16),
        end1_b=pad2(p["end1_b"], 1, Sp),
        end2_w=pad2(p["end2_w"], Sp, Op).astype(jnp.bfloat16),
        end2_b=pad2(p["end2_b"], 1, Op),
    )
    dims = dict(R=R, G=G, Gh=Gh, S=S, O=O, Rp=Rp, Ghp=Ghp, Sp=Sp, Op=Op, NB=NB)
    return w, dims


def _cond_bias(p, genre, dims):
    # cond_bias[nb, b] = genre_emb[genre[b]] @ cond_w[nb] + cond_b[nb] + dil_b[nb]
    cond = p["genre_emb"][genre]                           # (B, R) gather (glue)
    cb = jnp.einsum("br,nrg->nbg",
                    cond.astype(jnp.bfloat16),
                    p["cond_w"].astype(jnp.bfloat16),
                    preferred_element_type=jnp.float32)
    cb = cb + p["cond_b"] + p["dil_b"]                     # (NB, B, G) f32
    Gh, Ghp = dims["Gh"], dims["Ghp"]
    f = jnp.pad(cb[..., :Gh], ((0, 0), (0, 0), (0, Ghp - Gh)))
    g = jnp.pad(cb[..., Gh:], ((0, 0), (0, 0), (0, Ghp - Gh)))
    return jnp.concatenate([f, g], axis=-1)                # (NB, B, 2*Ghp)


@functools.partial(jax.jit, static_argnames=("layers", "stacks"))
def wavenet_forward(x_nct, genre, params, *, layers, stacks):
    """x_nct: (B, output_channels, T) float32 (PyTorch layout); genre: (B,) int32."""
    B, O, T = x_nct.shape
    w, dims = _prep_weights(params)
    NB, Op, Ghp, Sp, Rp = (dims["NB"], dims["Op"], dims["Ghp"],
                           dims["Sp"], dims["Rp"])
    M = B * T

    # NCT -> (B*T, Op) bf16 slab: batch folded into the matmul M dimension.
    x = jnp.transpose(x_nct, (0, 2, 1)).reshape(M, O)
    x = jnp.pad(x, ((0, 0), (0, Op - O))).astype(jnp.bfloat16)

    # Conditioning 1x1 conv hoisted out of the kernel (dil_b/cond_b folded in),
    # expanded per row so the kernel adds a contiguous (B*T, 2*Ghp) slab.
    cb = _cond_bias(params, genre, dims)                   # (NB, B, 2*Ghp) f32
    cond_bias = jnp.repeat(cb, T, axis=1)                  # (NB, B*T, 2*Ghp)

    weight_names = ("start_w", "start_b", "dil_w", "so_w", "so_b",
                    "end1_w", "end1_b", "end2_w", "end2_b")
    weights = [w[k] for k in weight_names]
    inputs = [x, cond_bias] + weights

    # Generation-aware VMEM budget: everything is resident (no grid, no
    # double-buffering); leave ~20% of physical VMEM as headroom.
    try:
        vmem_cap = int(pltpu.get_tpu_info().vmem_capacity_bytes)
    except Exception:
        vmem_cap = 64 << 20
    in_bytes = sum(int(np.prod(a.shape)) * a.dtype.itemsize for a in inputs)
    out_bytes = M * Op * 2
    act_bytes = M * (2 * Rp + 2 * Ghp + (Sp + Rp) + Sp + Rp + Op) * 4
    need = in_bytes + out_bytes + 4 * act_bytes
    vmem_limit = int(min(int(0.8 * vmem_cap), max(32 << 20, 2 * need)))

    kernel = functools.partial(wavenet_kernel, layers=layers, stacks=stacks,
                               s_pad=Sp, seq_len=T)
    vmem_spec = pl.BlockSpec(memory_space=pltpu.MemorySpace.VMEM)
    out = pl.pallas_call(
        kernel,
        out_shape=jax.ShapeDtypeStruct((M, Op), jnp.bfloat16),
        in_specs=[vmem_spec] * len(inputs),
        out_specs=vmem_spec,
        compiler_params=pltpu.CompilerParams(vmem_limit_bytes=vmem_limit),
    )(*inputs)

    out = out.astype(jnp.float32)[:, :O].reshape(B, T, O)  # drop lane padding
    return jnp.transpose(out, (0, 2, 1))                   # (B,T,O) -> NCT


# ----------------------------------------------------------------------------
# Parameters + pure-JAX reference (bf16-matmul-matched, unfused/unpadded).
# ----------------------------------------------------------------------------
def init_params(key, *, layers, stacks, R, G, S, O, num_genres):
    NB = layers * stacks
    keys = iter(jax.random.split(key, 32))

    def w(shape, scale=0.2):
        return jax.random.normal(next(keys), shape, jnp.float32) * scale

    return dict(
        start_w=w((O, R)), start_b=w((1, R), 0.05),
        genre_emb=w((num_genres, R), 0.5),
        dil_w=w((NB, 2, R, G)), dil_b=w((NB, 1, G), 0.05),
        cond_w=w((NB, R, G)), cond_b=w((NB, 1, G), 0.05),
        skip_w=w((NB, G // 2, S)), skip_b=w((NB, 1, S), 0.05),
        out_w=w((NB, G // 2, R)), out_b=w((NB, 1, R), 0.05),
        end1_w=w((S, S)), end1_b=w((1, S), 0.05),
        end2_w=w((S, O)), end2_b=w((1, O), 0.05),
    )


def wavenet_ref(x_nct, genre, p, *, layers, stacks):
    x = jnp.transpose(x_nct, (0, 2, 1))
    h = _mm(x, p["start_w"]) + p["start_b"]
    cond = p["genre_emb"][genre]
    B, T, _ = h.shape
    skip_sum = 0.0
    nb = 0
    for _ in range(stacks):
        for layer in range(layers):
            d = 2 ** layer
            R = h.shape[-1]
            h_prev = jnp.concatenate(
                [jnp.zeros((B, d, R), jnp.float32), h[:, :T - d, :]], axis=1)
            z = (_mm(h_prev, p["dil_w"][nb, 0]) + _mm(h, p["dil_w"][nb, 1])
                 + p["dil_b"][nb])
            cond_g = _mm(cond, p["cond_w"][nb]) + p["cond_b"][nb]
            z = z + cond_g[:, None, :]
            G2 = z.shape[-1] // 2
            g = jnp.tanh(z[..., :G2]) * jax.nn.sigmoid(z[..., G2:])
            skip_sum = skip_sum + _mm(g, p["skip_w"][nb]) + p["skip_b"][nb]
            h = h + _mm(g, p["out_w"][nb]) + p["out_b"][nb]
            nb += 1
    y = jax.nn.relu(skip_sum)
    y = jax.nn.relu(_mm(y, p["end1_w"]) + p["end1_b"])
    y = _mm(y, p["end2_w"]) + p["end2_b"]
    return jnp.transpose(y, (0, 2, 1))


if __name__ == "__main__":
    layers, stacks = 3, 2
    R, G, S, O = 16, 32, 16, 32        # residual / gate / skip / output channels
    num_genres = 10
    B, T = 2, 16

    key = jax.random.PRNGKey(0)
    kp, kx, kg = jax.random.split(key, 3)
    params = init_params(kp, layers=layers, stacks=stacks,
                         R=R, G=G, S=S, O=O, num_genres=num_genres)
    x = jax.random.normal(kx, (B, O, T), jnp.float32)   # PyTorch NCT layout
    genre = jax.random.randint(kg, (B,), 0, num_genres)

    out = wavenet_forward(x, genre, params, layers=layers, stacks=stacks)
    out = jax.block_until_ready(out)
    assert out.shape == (B, O, T)

    ref = wavenet_ref(x, genre, params, layers=layers, stacks=stacks)
    np.testing.assert_allclose(np.asarray(out), np.asarray(ref),
                               rtol=1e-2, atol=1e-2)
    print("KERNEL_OK")
</pallas_src>

<mosaic_0001>
module attributes {stable_mosaic.version = 11 : i64} {
  func.func @wavenet_kernel(%arg0: memref<32x128xbf16, #tpu.memory_space<vmem>>, %arg1: memref<6x32x256xf32, #tpu.memory_space<vmem>>, %arg2: memref<128x128xbf16, #tpu.memory_space<vmem>>, %arg3: memref<1x128xf32, #tpu.memory_space<vmem>>, %arg4: memref<6x256x256xbf16, #tpu.memory_space<vmem>>, %arg5: memref<6x128x256xbf16, #tpu.memory_space<vmem>>, %arg6: memref<6x1x256xf32, #tpu.memory_space<vmem>>, %arg7: memref<128x128xbf16, #tpu.memory_space<vmem>>, %arg8: memref<1x128xf32, #tpu.memory_space<vmem>>, %arg9: memref<128x128xbf16, #tpu.memory_space<vmem>>, %arg10: memref<1x128xf32, #tpu.memory_space<vmem>>, %arg11: memref<32x128xbf16, #tpu.memory_space<vmem>>) attributes {dimension_semantics = [], scalar_prefetch = 0 : i64, scratch_operands = 0 : i64, tpu.core_type = #tpu.core_type<tc>} {
    %c0 = arith.constant 0 : index
    %c0_0 = arith.constant 0 : index
    %0 = vector.load %arg0[%c0, %c0_0] : memref<32x128xbf16, #tpu.memory_space<vmem>>, vector<32x128xbf16>
    %c0_1 = arith.constant 0 : index
    %c0_2 = arith.constant 0 : index
    %1 = vector.load %arg2[%c0_1, %c0_2] : memref<128x128xbf16, #tpu.memory_space<vmem>>, vector<128x128xbf16>
    %cst = arith.constant dense<0.000000e+00> : vector<32x128xf32>
    %2 = tpu.matmul %0, %1, %cst {dimension_numbers = #tpu.dot_dimension_numbers<[1], [0], [0], [1], [0, 0, 1, 1], [], []>} : vector<32x128xbf16>, vector<128x128xbf16>, vector<32x128xf32> -> vector<32x128xf32>
    %c0_3 = arith.constant 0 : index
    %c0_4 = arith.constant 0 : index
    %3 = vector.load %arg3[%c0_3, %c0_4] : memref<1x128xf32, #tpu.memory_space<vmem>>, vector<1x128xf32>
    %4 = vector.broadcast %3 : vector<1x128xf32> to vector<32x128xf32>
    %5 = arith.addf %2, %4 : vector<32x128xf32>
    %cst_5 = arith.constant 0.000000e+00 : f32
    %6 = vector.broadcast %cst_5 : f32 to vector<32x128xf32>
    %7 = tpu.iota {dimensions = array<i32: 0>} : vector<32x128xi32>
    %c16_i32 = arith.constant 16 : i32
    %c0_i32 = arith.constant 0 : i32
    %8 = arith.cmpi eq, %c16_i32, %c0_i32 : i32
    %c1_i32 = arith.constant 1 : i32
    %9 = arith.select %8, %c1_i32, %c16_i32 : i32
    %10 = vector.broadcast %9 : i32 to vector<32x128xi32>
    %11 = arith.remsi %7, %10 : vector<32x128xi32>
    %c0_i32_6 = arith.constant 0 : i32
    %12 = vector.broadcast %c0_i32_6 : i32 to vector<32x128xi32>
    %13 = arith.cmpi ne, %11, %12 : vector<32x128xi32>
    %c0_i32_7 = arith.constant 0 : i32
    %14 = vector.broadcast %c0_i32_7 : i32 to vector<32x128xi32>
    %15 = arith.cmpi slt, %11, %14 : vector<32x128xi32>
    %c0_i32_8 = arith.constant 0 : i32
    %16 = arith.cmpi slt, %9, %c0_i32_8 : i32
    %17 = vector.broadcast %16 : i1 to vector<32x128xi1>
    %18 = vector.broadcast %17 : vector<32x128xi1> to vector<32x128xi1>
    %19 = arith.xori %15, %18 : vector<32x128xi1>
    %20 = arith.andi %19, %13 : vector<32x128xi1>
    %21 = vector.broadcast %9 : i32 to vector<32x128xi32>
    %22 = arith.addi %11, %21 : vector<32x128xi32>
    %23 = arith.select %20, %22, %11 : vector<32x128xi1>, vector<32x128xi32>
    %c1_i32_9 = arith.constant 1 : i32
    %24 = vector.broadcast %c1_i32_9 : i32 to vector<32x128xi32>
    %25 = arith.cmpi sge, %23, %24 : vector<32x128xi32>
    %c2_i32 = arith.constant 2 : i32
    %26 = vector.broadcast %c2_i32 : i32 to vector<32x128xi32>
    %27 = arith.cmpi sge, %23, %26 : vector<32x128xi32>
    %c4_i32 = arith.constant 4 : i32
    %28 = vector.broadcast %c4_i32 : i32 to vector<32x128xi32>
    %29 = arith.cmpi sge, %23, %28 : vector<32x128xi32>
    %c0_i32_10 = arith.constant 0 : i32
    %c2_i32_11 = arith.constant 2 : i32
    %30 = arith.addi %c0_i32_10, %c2_i32_11 : i32
    %c1_i32_12 = arith.constant 1 : i32
    %31:2 = scf.for %arg12 = %c0_i32_10 to %30 step %c1_i32_12 iter_args(%arg13 = %5, %arg14 = %6) -> (vector<32x128xf32>, vector<32x128xf32>)  : i32 {
      %c3_i32 = arith.constant 3 : i32
      %50 = arith.muli %arg12, %c3_i32 : i32
      %c0_i32_28 = arith.constant 0 : i32
      %51 = arith.addi %50, %c0_i32_28 : i32
      %52 = arith.truncf %arg13 : vector<32x128xf32> to vector<32x128xbf16>
      %c1_i32_29 = arith.constant 1 : i32
      %53 = tpu.dynamic_rotate %arg13 by %c1_i32_29 dim 0 : vector<32x128xf32>, i32 -> vector<32x128xf32>
      %cst_30 = arith.constant 0.000000e+00 : f32
      %54 = vector.broadcast %cst_30 : f32 to vector<32x128xf32>
      %55 = arith.select %25, %53, %54 : vector<32x128xi1>, vector<32x128xf32>
      %56 = arith.truncf %55 : vector<32x128xf32> to vector<32x128xbf16>
      %57 = tpu.concatenate %56, %52 in 1 : vector<32x128xbf16>, vector<32x128xbf16> -> vector<32x256xbf16>
      %58 = arith.index_cast %51 : i32 to index
      %c0_31 = arith.constant 0 : index
      %c0_32 = arith.constant 0 : index
      %59 = vector.load %arg4[%58, %c0_31, %c0_32] : memref<6x256x256xbf16, #tpu.memory_space<vmem>>, vector<1x256x256xbf16>
      %60 = vector.shape_cast %59 : vector<1x256x256xbf16> to vector<256x256xbf16>
      %cst_33 = arith.constant dense<0.000000e+00> : vector<32x256xf32>
      %61 = tpu.matmul %57, %60, %cst_33 {dimension_numbers = #tpu.dot_dimension_numbers<[1], [0], [0], [1], [0, 0, 1, 1], [], []>} : vector<32x256xbf16>, vector<256x256xbf16>, vector<32x256xf32> -> vector<32x256xf32>
      %62 = arith.index_cast %51 : i32 to index
      %c0_34 = arith.constant 0 : index
      %c0_35 = arith.constant 0 : index
      %63 = vector.load %arg1[%62, %c0_34, %c0_35] : memref<6x32x256xf32, #tpu.memory_space<vmem>>, vector<1x32x256xf32>
      %64 = vector.shape_cast %63 : vector<1x32x256xf32> to vector<32x256xf32>
      %65 = arith.addf %61, %64 : vector<32x256xf32>
      %66 = vector.extract_strided_slice %65 {offsets = [0, 0], sizes = [32, 128], strides = [1, 1]} : vector<32x256xf32> to vector<32x128xf32>
      %67 = math.tanh %66 : vector<32x128xf32>
      %68 = vector.extract_strided_slice %65 {offsets = [0, 128], sizes = [32, 128], strides = [1, 1]} : vector<32x256xf32> to vector<32x128xf32>
      %69 = arith.negf %68 : vector<32x128xf32>
      %70 = math.exp %69 : vector<32x128xf32>
      %cst_36 = arith.constant 1.000000e+00 : f32
      %71 = vector.broadcast %cst_36 : f32 to vector<32x128xf32>
      %72 = arith.addf %71, %70 : vector<32x128xf32>
      %73 = arith.divf %71, %72 : vector<32x128xf32>
      %74 = arith.mulf %67, %73 : vector<32x128xf32>
      %75 = arith.truncf %74 : vector<32x128xf32> to vector<32x128xbf16>
      %76 = arith.index_cast %51 : i32 to index
      %c0_37 = arith.constant 0 : index
      %c0_38 = arith.constant 0 : index
      %77 = vector.load %arg5[%76, %c0_37, %c0_38] : memref<6x128x256xbf16, #tpu.memory_space<vmem>>, vector<1x128x256xbf16>
      %78 = vector.shape_cast %77 : vector<1x128x256xbf16> to vector<128x256xbf16>
      %cst_39 = arith.constant dense<0.000000e+00> : vector<32x256xf32>
      %79 = tpu.matmul %75, %78, %cst_39 {dimension_numbers = #tpu.dot_dimension_numbers<[1], [0], [0], [1], [0, 0, 1, 1], [], []>} : vector<32x128xbf16>, vector<128x256xbf16>, vector<32x256xf32> -> vector<32x256xf32>
      %80 = arith.index_cast %51 : i32 to index
      %c0_40 = arith.constant 0 : index
      %c0_41 = arith.constant 0 : index
      %81 = vector.load %arg6[%80, %c0_40, %c0_41] : memref<6x1x256xf32, #tpu.memory_space<vmem>>, vector<1x1x256xf32>
      %82 = vector.shape_cast %81 : vector<1x1x256xf32> to vector<1x256xf32>
      %83 = vector.broadcast %82 : vector<1x256xf32> to vector<32x256xf32>
      %84 = arith.addf %79, %83 : vector<32x256xf32>
      %85 = vector.extract_strided_slice %84 {offsets = [0, 0], sizes = [32, 128], strides = [1, 1]} : vector<32x256xf32> to vector<32x128xf32>
      %86 = arith.addf %arg14, %85 : vector<32x128xf32>
      %87 = vector.extract_strided_slice %84 {offsets = [0, 128], sizes = [32, 128], strides = [1, 1]} : vector<32x256xf32> to vector<32x128xf32>
      %88 = arith.addf %arg13, %87 : vector<32x128xf32>
      %c3_i32_42 = arith.constant 3 : i32
      %89 = arith.muli %arg12, %c3_i32_42 : i32
      %c1_i32_43 = arith.constant 1 : i32
      %90 = arith.addi %89, %c1_i32_43 : i32
      %91 = arith.truncf %88 : vector<32x128xf32> to vector<32x128xbf16>
      %c2_i32_44 = arith.constant 2 : i32
      %92 = tpu.dynamic_rotate %88 by %c2_i32_44 dim 0 : vector<32x128xf32>, i32 -> vector<32x128xf32>
      %cst_45 = arith.constant 0.000000e+00 : f32
      %93 = vector.broadcast %cst_45 : f32 to vector<32x128xf32>
      %94 = arith.select %27, %92, %93 : vector<32x128xi1>, vector<32x128xf32>
      %95 = arith.truncf %94 : vector<32x128xf32> to vector<32x128xbf16>
      %96 = tpu.concatenate %95, %91 in 1 : vector<32x128xbf16>, vector<32x128xbf16> -> vector<32x256xbf16>
      %97 = arith.index_cast %90 : i32 to index
      %c0_46 = arith.constant 0 : index
      %c0_47 = arith.constant 0 : index
      %98 = vector.load %arg4[%97, %c0_46, %c0_47] : memref<6x256x256xbf16, #tpu.memory_space<vmem>>, vector<1x256x256xbf16>
      %99 = vector.shape_cast %98 : vector<1x256x256xbf16> to vector<256x256xbf16>
      %cst_48 = arith.constant dense<0.000000e+00> : vector<32x256xf32>
      %100 = tpu.matmul %96, %99, %cst_48 {dimension_numbers = #tpu.dot_dimension_numbers<[1], [0], [0], [1], [0, 0, 1, 1], [], []>} : vector<32x256xbf16>, vector<256x256xbf16>, vector<32x256xf32> -> vector<32x256xf32>
      %101 = arith.index_cast %90 : i32 to index
      %c0_49 = arith.constant 0 : index
      %c0_50 = arith.constant 0 : index
      %102 = vector.load %arg1[%101, %c0_49, %c0_50] : memref<6x32x256xf32, #tpu.memory_space<vmem>>, vector<1x32x256xf32>
      %103 = vector.shape_cast %102 : vector<1x32x256xf32> to vector<32x256xf32>
      %104 = arith.addf %100, %103 : vector<32x256xf32>
      %105 = vector.extract_strided_slice %104 {offsets = [0, 0], sizes = [32, 128], strides = [1, 1]} : vector<32x256xf32> to vector<32x128xf32>
      %106 = math.tanh %105 : vector<32x128xf32>
      %107 = vector.extract_strided_slice %104 {offsets = [0, 128], sizes = [32, 128], strides = [1, 1]} : vector<32x256xf32> to vector<32x128xf32>
      %108 = arith.negf %107 : vector<32x128xf32>
      %109 = math.exp %108 : vector<32x128xf32>
      %cst_51 = arith.constant 1.000000e+00 : f32
      %110 = vector.broadcast %cst_51 : f32 to vector<32x128xf32>
      %111 = arith.addf %110, %109 : vector<32x128xf32>
      %112 = arith.divf %110, %111 : vector<32x128xf32>
      %113 = arith.mulf %106, %112 : vector<32x128xf32>
      %114 = arith.truncf %113 : vector<32x128xf32> to vector<32x128xbf16>
      %115 = arith.index_cast %90 : i32 to index
      %c0_52 = arith.constant 0 : index
      %c0_53 = arith.constant 0 : index
      %116 = vector.load %arg5[%115, %c0_52, %c0_53] : memref<6x128x256xbf16, #tpu.memory_space<vmem>>, vector<1x128x256xbf16>
      %117 = vector.shape_cast %116 : vector<1x128x256xbf16> to vector<128x256xbf16>
      %cst_54 = arith.constant dense<0.000000e+00> : vector<32x256xf32>
      %118 = tpu.matmul %114, %117, %cst_54 {dimension_numbers = #tpu.dot_dimension_numbers<[1], [0], [0], [1], [0, 0, 1, 1], [], []>} : vector<32x128xbf16>, vector<128x256xbf16>, vector<32x256xf32> -> vector<32x256xf32>
      %119 = arith.index_cast %90 : i32 to index
      %c0_55 = arith.constant 0 : index
      %c0_56 = arith.constant 0 : index
      %120 = vector.load %arg6[%119, %c0_55, %c0_56] : memref<6x1x256xf32, #tpu.memory_space<vmem>>, vector<1x1x256xf32>
      %121 = vector.shape_cast %120 : vector<1x1x256xf32> to vector<1x256xf32>
      %122 = vector.broadcast %121 : vector<1x256xf32> to vector<32x256xf32>
      %123 = arith.addf %118, %122 : vector<32x256xf32>
      %124 = vector.extract_strided_slice %123 {offsets = [0, 0], sizes = [32, 128], strides = [1, 1]} : vector<32x256xf32> to vector<32x128xf32>
      %125 = arith.addf %86, %124 : vector<32x128xf32>
      %126 = vector.extract_strided_slice %123 {offsets = [0, 128], sizes = [32, 128], strides = [1, 1]} : vector<32x256xf32> to vector<32x128xf32>
      %127 = arith.addf %88, %126 : vector<32x128xf32>
      %c3_i32_57 = arith.constant 3 : i32
      %128 = arith.muli %arg12, %c3_i32_57 : i32
      %c2_i32_58 = arith.constant 2 : i32
      %129 = arith.addi %128, %c2_i32_58 : i32
      %130 = arith.truncf %127 : vector<32x128xf32> to vector<32x128xbf16>
      %c4_i32_59 = arith.constant 4 : i32
      %131 = tpu.dynamic_rotate %127 by %c4_i32_59 dim 0 : vector<32x128xf32>, i32 -> vector<32x128xf32>
      %cst_60 = arith.constant 0.000000e+00 : f32
      %132 = vector.broadcast %cst_60 : f32 to vector<32x128xf32>
      %133 = arith.select %29, %131, %132 : vector<32x128xi1>, vector<32x128xf32>
      %134 = arith.truncf %133 : vector<32x128xf32> to vector<32x128xbf16>
      %135 = tpu.concatenate %134, %130 in 1 : vector<32x128xbf16>, vector<32x128xbf16> -> vector<32x256xbf16>
      %136 = arith.index_cast %129 : i32 to index
      %c0_61 = arith.constant 0 : index
      %c0_62 = arith.constant 0 : index
      %137 = vector.load %arg4[%136, %c0_61, %c0_62] : memref<6x256x256xbf16, #tpu.memory_space<vmem>>, vector<1x256x256xbf16>
      %138 = vector.shape_cast %137 : vector<1x256x256xbf16> to vector<256x256xbf16>
      %cst_63 = arith.constant dense<0.000000e+00> : vector<32x256xf32>
      %139 = tpu.matmul %135, %138, %cst_63 {dimension_numbers = #tpu.dot_dimension_numbers<[1], [0], [0], [1], [0, 0, 1, 1], [], []>} : vector<32x256xbf16>, vector<256x256xbf16>, vector<32x256xf32> -> vector<32x256xf32>
      %140 = arith.index_cast %129 : i32 to index
      %c0_64 = arith.constant 0 : index
      %c0_65 = arith.constant 0 : index
      %141 = vector.load %arg1[%140, %c0_64, %c0_65] : memref<6x32x256xf32, #tpu.memory_space<vmem>>, vector<1x32x256xf32>
      %142 = vector.shape_cast %141 : vector<1x32x256xf32> to vector<32x256xf32>
      %143 = arith.addf %139, %142 : vector<32x256xf32>
      %144 = vector.extract_strided_slice %143 {offsets = [0, 0], sizes = [32, 128], strides = [1, 1]} : vector<32x256xf32> to vector<32x128xf32>
      %145 = math.tanh %144 : vector<32x128xf32>
      %146 = vector.extract_strided_slice %143 {offsets = [0, 128], sizes = [32, 128], strides = [1, 1]} : vector<32x256xf32> to vector<32x128xf32>
      %147 = arith.negf %146 : vector<32x128xf32>
      %148 = math.exp %147 : vector<32x128xf32>
      %cst_66 = arith.constant 1.000000e+00 : f32
      %149 = vector.broadcast %cst_66 : f32 to vector<32x128xf32>
      %150 = arith.addf %149, %148 : vector<32x128xf32>
      %151 = arith.divf %149, %150 : vector<32x128xf32>
      %152 = arith.mulf %145, %151 : vector<32x128xf32>
      %153 = arith.truncf %152 : vector<32x128xf32> to vector<32x128xbf16>
      %154 = arith.index_cast %129 : i32 to index
      %c0_67 = arith.constant 0 : index
      %c0_68 = arith.constant 0 : index
      %155 = vector.load %arg5[%154, %c0_67, %c0_68] : memref<6x128x256xbf16, #tpu.memory_space<vmem>>, vector<1x128x256xbf16>
      %156 = vector.shape_cast %155 : vector<1x128x256xbf16> to vector<128x256xbf16>
      %cst_69 = arith.constant dense<0.000000e+00> : vector<32x256xf32>
      %157 = tpu.matmul %153, %156, %cst_69 {dimension_numbers = #tpu.dot_dimension_numbers<[1], [0], [0], [1], [0, 0, 1, 1], [], []>} : vector<32x128xbf16>, vector<128x256xbf16>, vector<32x256xf32> -> vector<32x256xf32>
      %158 = arith.index_cast %129 : i32 to index
      %c0_70 = arith.constant 0 : index
      %c0_71 = arith.constant 0 : index
      %159 = vector.load %arg6[%158, %c0_70, %c0_71] : memref<6x1x256xf32, #tpu.memory_space<vmem>>, vector<1x1x256xf32>
      %160 = vector.shape_cast %159 : vector<1x1x256xf32> to vector<1x256xf32>
      %161 = vector.broadcast %160 : vector<1x256xf32> to vector<32x256xf32>
      %162 = arith.addf %157, %161 : vector<32x256xf32>
      %163 = vector.extract_strided_slice %162 {offsets = [0, 0], sizes = [32, 128], strides = [1, 1]} : vector<32x256xf32> to vector<32x128xf32>
      %164 = arith.addf %125, %163 : vector<32x128xf32>
      %165 = vector.extract_strided_slice %162 {offsets = [0, 128], sizes = [32, 128], strides = [1, 1]} : vector<32x256xf32> to vector<32x128xf32>
      %166 = arith.addf %127, %165 : vector<32x128xf32>
      scf.yield %166, %164 : vector<32x128xf32>, vector<32x128xf32>
    }
    %c2_i32_13 = arith.constant 2 : i32
    %cst_14 = arith.constant 0.000000e+00 : f32
    %32 = vector.broadcast %cst_14 : f32 to vector<32x128xf32>
    %33 = arith.maximumf %31#1, %32 : vector<32x128xf32>
    %c0_15 = arith.constant 0 : index
    %c0_16 = arith.constant 0 : index
    %34 = vector.load %arg7[%c0_15, %c0_16] : memref<128x128xbf16, #tpu.memory_space<vmem>>, vector<128x128xbf16>
    %35 = arith.truncf %33 : vector<32x128xf32> to vector<32x128xbf16>
    %cst_17 = arith.constant dense<0.000000e+00> : vector<32x128xf32>
    %36 = tpu.matmul %35, %34, %cst_17 {dimension_numbers = #tpu.dot_dimension_numbers<[1], [0], [0], [1], [0, 0, 1, 1], [], []>} : vector<32x128xbf16>, vector<128x128xbf16>, vector<32x128xf32> -> vector<32x128xf32>
    %c0_18 = arith.constant 0 : index
    %c0_19 = arith.constant 0 : index
    %37 = vector.load %arg8[%c0_18, %c0_19] : memref<1x128xf32, #tpu.memory_space<vmem>>, vector<1x128xf32>
    %38 = vector.broadcast %37 : vector<1x128xf32> to vector<32x128xf32>
    %39 = arith.addf %36, %38 : vector<32x128xf32>
    %cst_20 = arith.constant 0.000000e+00 : f32
    %40 = vector.broadcast %cst_20 : f32 to vector<32x128xf32>
    %41 = arith.maximumf %39, %40 : vector<32x128xf32>
    %c0_21 = arith.constant 0 : index
    %c0_22 = arith.constant 0 : index
    %42 = vector.load %arg9[%c0_21, %c0_22] : memref<128x128xbf16, #tpu.memory_space<vmem>>, vector<128x128xbf16>
    %43 = arith.truncf %41 : vector<32x128xf32> to vector<32x128xbf16>
    %cst_23 = arith.constant dense<0.000000e+00> : vector<32x128xf32>
    %44 = tpu.matmul %43, %42, %cst_23 {dimension_numbers = #tpu.dot_dimension_numbers<[1], [0], [0], [1], [0, 0, 1, 1], [], []>} : vector<32x128xbf16>, vector<128x128xbf16>, vector<32x128xf32> -> vector<32x128xf32>
    %c0_24 = arith.constant 0 : index
    %c0_25 = arith.constant 0 : index
    %45 = vector.load %arg10[%c0_24, %c0_25] : memref<1x128xf32, #tpu.memory_space<vmem>>, vector<1x128xf32>
    %46 = vector.broadcast %45 : vector<1x128xf32> to vector<32x128xf32>
    %47 = arith.addf %44, %46 : vector<32x128xf32>
    %48 = arith.truncf %47 : vector<32x128xf32> to vector<32x128xbf16>
    %c0_26 = arith.constant 0 : index
    %c0_27 = arith.constant 0 : index
    %49 = vector.load %arg11[%c0_26, %c0_27] : memref<32x128xbf16, #tpu.memory_space<vmem>>, vector<32x128xbf16>
    tpu.vector_store %arg11[%c0_26, %c0_27], %48 {strides = array<i32>} : memref<32x128xbf16, #tpu.memory_space<vmem>>, vector<32x128xbf16>,
    return
  }
}

</mosaic_0001>

<bundles_post_ra>
// kernel: wavenet_forward.1
= control target key start
LH: loop header
LB: loop body
LE: loop exit
PB: predicated region body
PF: predicated region fallthrough
CT: control target
= control target key end

     0   :  { %v141_v10 = vlaneseq  ;;  %v3559_v24 = vmov 0.0   ;;  %v3561_v25 = vmov 0.0   ;;  %v3563_v26 = vmov 0.0   ;;  %s4279_s1 = inlined_call_operand.vmem [shape: f32[6,32,256], index: 1, kind: input, shape index: {}]   ;;  %s4280_s2 = inlined_call_operand.vmem [shape: bf16[128,128], index: 2, kind: input, shape index: {}]   ;;  %s4281_s4 = inlined_call_operand.vmem [shape: bf16[6,256,256], index: 4, kind: input, shape index: {}]   ;;  %s4282_s5 = inlined_call_operand.vmem [shape: bf16[6,128,256], index: 5, kind: input, shape index: {}]   ;;  %s4283_s6 = inlined_call_operand.vmem [shape: f32[6,1,256], index: 6, kind: input, shape index: {}]   ;;  %s4284_s7 = inlined_call_operand.vmem [shape: bf16[128,128], index: 7, kind: input, shape index: {}]   ;;  %s4285_s8 = inlined_call_operand.vmem [shape: f32[1,128], index: 8, kind: input, shape index: {}]   ;;  %s4286_s9 = inlined_call_operand.vmem [shape: bf16[128,128], index: 9, kind: input, shape index: {}]   ;;  %s4287_s10 = inlined_call_operand.vmem [shape: f32[1,128], index: 10, kind: input, shape index: {}]   ;;  %s4288_s11 = inlined_call_operand.vmem [shape: bf16[32,128], index: 11, kind: output, shape index: {}]   ;;  %s4289_s3 = inlined_call_operand.vmem [shape: f32[1,128], index: 3, kind: input, shape index: {}]   ;;  %s4290_s0 = inlined_call_operand.vmem [shape: bf16[32,128], index: 0, kind: input, shape index: {}]  }
   0x1   :  { %v3018_v0 = vld [vmem:[%s4280_s2 + $0x38] sm:$0xff]  ;;  %v3017_v1 = vld [vmem:[%s4280_s2 + $0x30] sm:$0xff]  ;;  %v3016_v2 = vld [vmem:[%s4280_s2 + $0x28] sm:$0xff]  ;;  %v3565_v27 = vmov 0.0  }
   0x2   :  { %122 = vmatpush.bf16.msra.mxu0 %v3018_v0  ;;  %3193 = vmatpush.bf16.msra.mxu1 %v3018_v0  ;;  %v3015_v3 = vld [vmem:[%s4280_s2 + $0x20] sm:$0xff]  ;;  %v3014_v4 = vld [vmem:[%s4280_s2 + $0x18] sm:$0xff]  ;;  %v3013_v5 = vld [vmem:[%s4280_s2 + $0x10] sm:$0xff]  ;;  %v3542_v11 = vshrl.u32 %v141_v10, 7 }
   0x3   :  { %v3012_v6 = vld [vmem:[%s4280_s2 + $0x8] sm:$0xff]  ;;  %v3011_v7 = vld [vmem:[%s4280_s2] sm:$0xff] }
   0x4   :  { %v3009_v8 = vld [vmem:[%s4290_s0] sm:$0xff]  ;;  %v3010_v9 = vld [vmem:[%s4290_s0 + $0x8] sm:$0xff]  ;;  %v144_v12 = vadd.s32 16, %v3542_v11  ;;  %v3546_v13 = vand.u32 15, %v3542_v11 }
   0x5   :  { %v3305_v15 = vld [vmem:[%s4289_s3] ss:$0 sm:$0xff]  ;;  %s3575_s3 = smov 0  }
   0x6   :  { %123 = vmatpush.bf16.msra.mxu0 %v3017_v1  ;;  %3194 = vmatpush.bf16.msra.mxu1 %v3017_v1  ;;  %v3548_v14 = vand.u32 15, %v144_v12  ;;  %vm194_vm0 = vcmp.ge.s32.totalorder %v3546_v13, 1  ;;  %vm198_vm2 = vcmp.ge.s32.totalorder %v3546_v13, 2  ;;  %vm202_vm4 = vcmp.ge.s32.totalorder %v3546_v13, 4 }
   0x8   :  { %vm196_vm1 = vcmp.ge.s32.totalorder %v3548_v14, 1  ;;  %vm200_vm3 = vcmp.ge.s32.totalorder %v3548_v14, 2  ;;  %vm204_vm5 = vcmp.ge.s32.totalorder %v3548_v14, 4 }
   0xa   :  { %124 = vmatpush.bf16.msra.mxu0 %v3016_v2  ;;  %3195 = vmatpush.bf16.msra.mxu1 %v3016_v2 }
   0xe   :  { %125 = vmatpush.bf16.msra.mxu0 %v3015_v3  ;;  %3196 = vmatpush.bf16.msra.mxu1 %v3015_v3 }
  0x12   :  { %126 = vmatpush.bf16.msra.mxu0 %v3014_v4  ;;  %3197 = vmatpush.bf16.msra.mxu1 %v3014_v4 }
  0x16   :  { %127 = vmatpush.bf16.msra.mxu0 %v3013_v5  ;;  %3198 = vmatpush.bf16.msra.mxu1 %v3013_v5 }
  0x1a   :  { %128 = vmatpush.bf16.msra.mxu0 %v3012_v6  ;;  %3199 = vmatpush.bf16.msra.mxu1 %v3012_v6 }
  0x1e   :  { %129 = vmatpush.bf16.msra.mxu0 %v3011_v7  ;;  %3200 = vmatpush.bf16.msra.mxu1 %v3011_v7 }
  0x21   :  { %130 = vmatmul.bf16.vlgmr.msra.gmra.mxu0 %v3009_v8  ;;  %135 = vmatmul.bf16.vlgmr.msra.gmra.mxu1 %v3010_v9 }
  0x9e   :  { %v131_v16 = vpop.f32.mrf.mxu0  ;;  %v136_v17 = vpop.f32.mrf.mxu1 }
  0x9f   :  { %v132_v18 = vadd.f32 %v3305_v15, %v131_v16   ;;  %v137_v19 = vadd.f32 %v3305_v15, %v136_v17  }
  0xa6   :  { %v133_v20 = vpop.f32.mrf.mxu0  ;;  %v138_v21 = vpop.f32.mrf.mxu1 }
  0xa7   :  { %v134_v22 = vadd.f32 %v3305_v15, %v133_v20   ;;  %v139_v23 = vadd.f32 %v3305_v15, %v138_v21  }
  0xa8 LB: > { %s3019_s18 = smul.u32 768, %s3450_s3  ;;  %v225_v59 = vrot.slane %v3446_v18, 7  ;;  %v228_v60 = vrot.slane %v3434_v23, 7  ;;  %vm229_vm6 = vcmp.lt.s32.totalorder %v3542_v11, 1  ;;  %v226_v17 = vrot.slane %v3442_v22, 7  ;;  %s3450_s3 = sphi %s3575_s3, %s211_s3   ;;  %v3446_v18 = vphi %v132_v18, %v1917_v18   ;;  %v3442_v22 = vphi %v134_v22, %v1918_v22   ;;  %v3438_v19 = vphi %v137_v19, %v1919_v19   ;;  %v3434_v23 = vphi %v139_v23, %v1920_v23   ;;  %v3430_v27 = vphi %v3565_v27, %v4302_v27   ;;  %v3426_v26 = vphi %v3563_v26, %v4301_v26   ;;  %v3422_v25 = vphi %v3561_v25, %v4300_v25   ;;  %v3418_v24 = vphi %v3559_v24, %v4299_v24  }
  0xa9   : > { %s3053_s22 = smul.u32 384, %s3450_s3 }
  0xaa   : > { %s3608_s21 = scalar_lea.vmem %s4281_s4, %s3019_s18  ;;  %s3052_s26 = smul.u32 192, %s3450_s3 }
  0xab   : > { %v3034_v28 = vld [vmem:[%s3608_s21 + $0x74] sm:$0xf]  ;;  %v2292_v29 = vld [vmem:[%s3608_s21 + $0x78] sm:$0xf0]  ;;  %v3032_v33 = vld [vmem:[%s3608_s21 + $0x64] sm:$0xf]  ;;  %s3711_s25 = scalar_lea.vmem %s4282_s5, %s3053_s22 }
  0xac   : > { %v3050_v30 = vld [vmem:[%s3608_s21 + $0xf4] sm:$0xf]  ;;  %v2295_v31 = vor.u32 %v3034_v28, %v2292_v29  ;;  %v2356_v32 = vld [vmem:[%s3608_s21 + $0xf8] sm:$0xf0]  ;;  %v2284_v34 = vld [vmem:[%s3608_s21 + $0x68] sm:$0xf0]  ;;  %s3733_s29 = scalar_lea.vmem %s4279_s1, %s3052_s26 }
  0xad   : > { %v2359_v35 = vor.u32 %v3050_v30, %v2356_v32  ;;  %v3048_v36 = vld [vmem:[%s3608_s21 + $0xe4] sm:$0xf]  ;;  %v2348_v37 = vld [vmem:[%s3608_s21 + $0xe8] sm:$0xf0]  ;;  %v2287_v38 = vor.u32 %v3032_v33, %v2284_v34  ;;  %v3030_v40 = vld [vmem:[%s3608_s21 + $0x54] sm:$0xf] }
  0xae   : > { %510 = vmatpush.bf16.msra.mxu2 %v2295_v31  ;;  %v2351_v39 = vor.u32 %v3048_v36, %v2348_v37  ;;  %v2276_v41 = vld [vmem:[%s3608_s21 + $0x58] sm:$0xf0]  ;;  %v3046_v42 = vld [vmem:[%s3608_s21 + $0xd4] sm:$0xf]  ;;  %v2290_v44 = vld [vmem:[%s3608_s21 + $0x70] sm:$0xf]  ;;  %v233_v31 = vsel %vm229_vm6, %v228_v60, %v225_v59  ;;  %v232_v37 = vsel %vm229_vm6, %v225_v59, %v226_v17 }
  0xaf   : > { %529 = vmatpush.bf16.msra.mxu3 %v2359_v35  ;;  %v2340_v43 = vld [vmem:[%s3608_s21 + $0xd8] sm:$0xf0]  ;;  %v2279_v45 = vor.u32 %v3030_v40, %v2276_v41  ;;  %v3028_v46 = vld [vmem:[%s3608_s21 + $0x44] sm:$0xf]  ;;  %v2268_v47 = vld [vmem:[%s3608_s21 + $0x48] sm:$0xf0] }
  0xb0   : > { %v3035_v48 = vld [vmem:[%s3608_s21 + $0x74] sm:$0xf0]  ;;  %v2343_v49 = vor.u32 %v3046_v42, %v2340_v43  ;;  %v3044_v50 = vld [vmem:[%s3608_s21 + $0xc4] sm:$0xf]  ;;  %v2332_v51 = vld [vmem:[%s3608_s21 + $0xc8] sm:$0xf0]  ;;  %v2271_v61 = vor.u32 %v3028_v46, %v2268_v47 }
  0xb1   : > { %v2291_v52 = vor.u32 %v3035_v48, %v2290_v44  ;;  %v2354_v53 = vld [vmem:[%s3608_s21 + $0xf0] sm:$0xf]  ;;  %v3051_v54 = vld [vmem:[%s3608_s21 + $0xf4] sm:$0xf0]  ;;  %v2282_v55 = vld [vmem:[%s3608_s21 + $0x60] sm:$0xf]  ;;  %v2335_v1 = vor.u32 %v3044_v50, %v2332_v51  ;;  %v239_v50 = vpack.c.bf16 %v232_v37, %v232_v37 }
  0xb2   : > { %511 = vmatpush.bf16.msra.mxu2 %v2287_v38  ;;  %v3033_v56 = vld [vmem:[%s3608_s21 + $0x64] sm:$0xf0]  ;;  %v2355_v57 = vor.u32 %v3051_v54, %v2354_v53  ;;  %v3026_v62 = vld [vmem:[%s3608_s21 + $0x34] sm:$0xf]  ;;  %v2346_v63 = vld [vmem:[%s3608_s21 + $0xe0] sm:$0xf]  ;;  %v221_v53 = vpack.c.bf16 %v3446_v18, %v3446_v18  ;;  %v222_v54 = vpack.c.bf16 %v3442_v22, %v3442_v22 }
  0xb3   : > { %530 = vmatpush.bf16.msra.mxu3 %v2351_v39  ;;  %472 = vmatpush.bf16.msra.mxu0 %v2291_v52  ;;  %v2283_v58 = vor.u32 %v3033_v56, %v2282_v55  ;;  %v3049_v0 = vld [vmem:[%s3608_s21 + $0xe4] sm:$0xf0]  ;;  %v2260_v2 = vld [vmem:[%s3608_s21 + $0x38] sm:$0xf0]  ;;  %v2274_v4 = vld [vmem:[%s3608_s21 + $0x50] sm:$0xf] }
  0xb4   : > { %491 = vmatpush.bf16.msra.mxu1 %v2355_v57  ;;  %v2347_v3 = vor.u32 %v3049_v0, %v2346_v63  ;;  %v3031_v5 = vld [vmem:[%s3608_s21 + $0x54] sm:$0xf0]  ;;  %v3042_v6 = vld [vmem:[%s3608_s21 + $0xb4] sm:$0xf]  ;;  %v2324_v7 = vld [vmem:[%s3608_s21 + $0xb8] sm:$0xf0]  ;;  %v2263_v12 = vor.u32 %v3026_v62, %v2260_v2 }
  0xb5   : > { %v2275_v8 = vor.u32 %v3031_v5, %v2274_v4  ;;  %v2338_v9 = vld [vmem:[%s3608_s21 + $0xd0] sm:$0xf]  ;;  %v3047_v10 = vld [vmem:[%s3608_s21 + $0xd4] sm:$0xf0]  ;;  %v2266_v15 = vld [vmem:[%s3608_s21 + $0x40] sm:$0xf]  ;;  %v2327_v20 = vor.u32 %v3042_v6, %v2324_v7  ;;  %v258_v6 = vunpack.c.l.b16 %v221_v53  ;;  %v259_v7 = vunpack.c.l.b16 %v222_v54 }
  0xb6   : > { %512 = vmatpush.bf16.msra.mxu2 %v2279_v45  ;;  %v3029_v16 = vld [vmem:[%s3608_s21 + $0x44] sm:$0xf0]  ;;  %v3024_v21 = vld [vmem:[%s3608_s21 + $0x24] sm:$0xf]  ;;  %v2252_v28 = vld [vmem:[%s3608_s21 + $0x28] sm:$0xf0]  ;;  %v2339_v30 = vor.u32 %v3047_v10, %v2338_v9 }
  0xb7   : > { %531 = vmatpush.bf16.msra.mxu3 %v2343_v49  ;;  %473 = vmatpush.bf16.msra.mxu0 %v2283_v58  ;;  %v3040_v29 = vld [vmem:[%s3608_s21 + $0xa4] sm:$0xf]  ;;  %v2316_v32 = vld [vmem:[%s3608_s21 + $0xa8] sm:$0xf0]  ;;  %v2330_v33 = vld [vmem:[%s3608_s21 + $0xc0] sm:$0xf]  ;;  %v2267_v35 = vor.u32 %v3029_v16, %v2266_v15  ;;  %v2255_v36 = vor.u32 %v3024_v21, %v2252_v28 }
  0xb8   : > { %492 = vmatpush.bf16.msra.mxu1 %v2347_v3  ;;  %v3045_v34 = vld [vmem:[%s3608_s21 + $0xc4] sm:$0xf0]  ;;  %v234_v38 = vsel %vm194_vm0, %v233_v31, 0.0  ;;  %v2258_v39 = vld [vmem:[%s3608_s21 + $0x30] sm:$0xf]  ;;  %v2319_v41 = vor.u32 %v3040_v29, %v2316_v32  ;;  %v247_v3 = vunpack.c.l.b16 %v239_v50  ;;  %v227_v15 = vrot.slane %v3438_v19, 7 }
  0xb9   : > { %v3027_v40 = vld [vmem:[%s3608_s21 + $0x34] sm:$0xf0]  ;;  %v3022_v42 = vld [vmem:[%s3608_s21 + $0x14] sm:$0xf]  ;;  %v2244_v43 = vld [vmem:[%s3608_s21 + $0x18] sm:$0xf0]  ;;  %v2331_v45 = vor.u32 %v3045_v34, %v2330_v33  ;;  %v238_v49 = vpack.c.bf16 %v234_v38, %v234_v38  ;;  %v262_v29 = vpack.c.b16 %v259_v7, %v258_v6 }
  0xba   : > { %513 = vmatpush.bf16.msra.mxu2 %v2271_v61  ;;  %v3038_v44 = vld [vmem:[%s3608_s21 + $0x94] sm:$0xf]  ;;  %v2308_v46 = vld [vmem:[%s3608_s21 + $0x98] sm:$0xf0]  ;;  %v2322_v47 = vld [vmem:[%s3608_s21 + $0xb0] sm:$0xf]  ;;  %v2259_v51 = vor.u32 %v3027_v40, %v2258_v39  ;;  %v2247_v52 = vor.u32 %v3022_v42, %v2244_v43  ;;  %v231_v33 = vsel %vm229_vm6, %v226_v17, %v227_v15  ;;  %v230_v37 = vsel %vm229_vm6, %v227_v15, %v228_v60 }
  0xbb   : > { %532 = vmatpush.bf16.msra.mxu3 %v2335_v1  ;;  %474 = vmatpush.bf16.msra.mxu0 %v2275_v8  ;;  %v3043_v48 = vld [vmem:[%s3608_s21 + $0xb4] sm:$0xf0]  ;;  %v2250_v55 = vld [vmem:[%s3608_s21 + $0x20] sm:$0xf]  ;;  %v3025_v56 = vld [vmem:[%s3608_s21 + $0x24] sm:$0xf0]  ;;  %v2311_v57 = vor.u32 %v3038_v44, %v2308_v46  ;;  %v246_v2 = vunpack.c.l.b16 %v238_v49  ;;  %v223_v17 = vpack.c.bf16 %v3438_v19, %v3438_v19  ;;  %v224_v42 = vpack.c.bf16 %v3434_v23, %v3434_v23 }
  0xbc   : > { %493 = vmatpush.bf16.msra.mxu1 %v2339_v30  ;;  %v3020_v58 = vld [vmem:[%s3608_s21 + $0x4] sm:$0xf]  ;;  %v2236_v59 = vld [vmem:[%s3608_s21 + $0x8] sm:$0xf0]  ;;  %v2323_v62 = vor.u32 %v3043_v48, %v2322_v47  ;;  %v2314_v0 = vld [vmem:[%s3608_s21 + $0xa0] sm:$0xf]  ;;  %v2251_v4 = vor.u32 %v3025_v56, %v2250_v55 }
  0xbd   : > { %v3036_v61 = vld [vmem:[%s3608_s21 + $0x84] sm:$0xf]  ;;  %v2300_v63 = vld [vmem:[%s3608_s21 + $0x88] sm:$0xf0]  ;;  %v3041_v1 = vld [vmem:[%s3608_s21 + $0xa4] sm:$0xf0]  ;;  %v2239_v5 = vor.u32 %v3020_v58, %v2236_v59  ;;  %v250_v21 = vpack.c.b16 %v247_v3, %v246_v2  ;;  %v260_v60 = vunpack.c.l.b16 %v223_v17 }
  0xbe   : > { %514 = vmatpush.bf16.msra.mxu2 %v2263_v12  ;;  %v2242_v8 = vld [vmem:[%s3608_s21 + $0x10] sm:$0xf]  ;;  %v3023_v9 = vld [vmem:[%s3608_s21 + $0x14] sm:$0xf0]  ;;  %v2303_v10 = vor.u32 %v3036_v61, %v2300_v63  ;;  %v2315_v12 = vor.u32 %v3041_v1, %v2314_v0  ;;  %v2234_v30 = vld [vmem:[%s3608_s21] sm:$0xf] }
  0xbf   : > { %533 = vmatpush.bf16.msra.mxu3 %v2327_v20  ;;  %475 = vmatpush.bf16.msra.mxu0 %v2267_v35  ;;  %v2306_v16 = vld [vmem:[%s3608_s21 + $0x90] sm:$0xf]  ;;  %v3039_v20 = vld [vmem:[%s3608_s21 + $0x94] sm:$0xf0]  ;;  %v2243_v28 = vor.u32 %v3023_v9, %v2242_v8  ;;  %v3021_v31 = vld [vmem:[%s3608_s21 + $0x4] sm:$0xf0] }
  0xc0   : > { %494 = vmatpush.bf16.msra.mxu1 %v2331_v45  ;;  %v2307_v32 = vor.u32 %v3039_v20, %v2306_v16  ;;  %v2298_v34 = vld [vmem:[%s3608_s21 + $0x80] sm:$0xf]  ;;  %v3037_v35 = vld [vmem:[%s3608_s21 + $0x84] sm:$0xf0]  ;;  %v236_v38 = vsel %vm196_vm1, %v231_v33, 0.0  ;;  %v261_v45 = vunpack.c.l.b16 %v224_v42  ;;  %s2366_s30 = smul.u32 6, %s3450_s3 }
  0xc1   : > { %v2299_v39 = vor.u32 %v3037_v35, %v2298_v34  ;;  %v240_v40 = vpack.c.bf16 %v236_v38, %v236_v38  ;;  %v3068_v48 = vld [vmem:[%s3711_s25 + $0x74] sm:$0xf]  ;;  %v2427_v49 = vld [vmem:[%s3711_s25 + $0x78] sm:$0xf0]  ;;  %v2425_v50 = vld [vmem:[%s3711_s25 + $0x70] sm:$0xf] }
  0xc2   : > { %515 = vmatpush.bf16.msra.mxu2 %v2255_v36  ;;  %v2235_v36 = vor.u32 %v3021_v31, %v2234_v30  ;;  %v263_v47 = vpack.c.b16 %v261_v45, %v260_v60  ;;  %v3066_v54 = vld [vmem:[%s3711_s25 + $0x64] sm:$0xf]  ;;  %v2419_v55 = vld [vmem:[%s3711_s25 + $0x68] sm:$0xf0]  ;;  %v2417_v56 = vld [vmem:[%s3711_s25 + $0x60] sm:$0xf]  ;;  %s3852_s14 = scalar_lea.vmem %s4283_s6, %s2366_s30 }
  0xc3   : > { %534 = vmatpush.bf16.msra.mxu3 %v2319_v41  ;;  %476 = vmatpush.bf16.msra.mxu0 %v2259_v51  ;;  %v241_v41 = vpack.c.bf16 %v230_v37, %v230_v37  ;;  %v248_v43 = vunpack.c.l.b16 %v240_v40  ;;  %v2430_v51 = vor.u32 %v3068_v48, %v2427_v49  ;;  %v3067_v58 = vld [vmem:[%s3711_s25 + $0x64] sm:$0xf0]  ;;  %v3064_v61 = vld [vmem:[%s3711_s25 + $0x54] sm:$0xf]  ;;  %v2409_v63 = vld [vmem:[%s3711_s25 + $0x50] sm:$0xf] }
  0xc4   : > { %495 = vmatpush.bf16.msra.mxu1 %v2323_v62  ;;  %v2418_v59 = vor.u32 %v3067_v58, %v2417_v56  ;;  %v2411_v62 = vld [vmem:[%s3711_s25 + $0x58] sm:$0xf0]  ;;  %v3065_v1 = vld [vmem:[%s3711_s25 + $0x54] sm:$0xf0]  ;;  %v3062_v3 = vld [vmem:[%s3711_s25 + $0x44] sm:$0xf] }
  0xc5   : > { %v249_v44 = vunpack.c.l.b16 %v241_v41  ;;  %v2414_v0 = vor.u32 %v3064_v61, %v2411_v62  ;;  %v2410_v2 = vor.u32 %v3065_v1, %v2409_v63  ;;  %v3063_v7 = vld [vmem:[%s3711_s25 + $0x44] sm:$0xf0]  ;;  %v3060_v9 = vld [vmem:[%s3711_s25 + $0x34] sm:$0xf]  ;;  %v3061_v16 = vld [vmem:[%s3711_s25 + $0x34] sm:$0xf0] }
  0xc6   : > { %516 = vmatpush.bf16.msra.mxu2 %v2247_v52  ;;  %v3069_v52 = vld [vmem:[%s3711_s25 + $0x74] sm:$0xf0]  ;;  %v305_v20 = vld [vmem:[%s3733_s29 + $0x8] sm:$0xff]  ;;  %v2385_v31 = vld [vmem:[%s3711_s25 + $0x20] sm:$0xf]  ;;  %s211_s3 = sadd.s32 1, %s3450_s3  }
  0xc7   : > { %535 = vmatpush.bf16.msra.mxu3 %v2311_v57  ;;  %477 = vmatpush.bf16.msra.mxu0 %v2251_v4  ;;  %v251_v46 = vpack.c.b16 %v249_v44, %v248_v43  ;;  %v2426_v53 = vor.u32 %v3069_v52, %v2425_v50  ;;  %v2422_v57 = vor.u32 %v3066_v54, %v2419_v55  ;;  %v2403_v4 = vld [vmem:[%s3711_s25 + $0x48] sm:$0xf0]  ;;  %v3059_v35 = vld [vmem:[%s3711_s25 + $0x24] sm:$0xf0]  ;;  %v3056_v38 = vld [vmem:[%s3711_s25 + $0x14] sm:$0xf] }
  0xc8   : > { %496 = vmatpush.bf16.msra.mxu1 %v2315_v12  ;;  %v2406_v6 = vor.u32 %v3062_v3, %v2403_v4  ;;  %v2393_v12 = vld [vmem:[%s3711_s25 + $0x30] sm:$0xf]  ;;  %v2387_v30 = vld [vmem:[%s3711_s25 + $0x28] sm:$0xf0]  ;;  %v3057_v42 = vld [vmem:[%s3711_s25 + $0x14] sm:$0xf0] }
  0xc9   : > { %v2377_v40 = vld [vmem:[%s3711_s25 + $0x10] sm:$0xf]  ;;  %v307_v43 = vld [vmem:[%s3733_s29 + $0x18] sm:$0xff]  ;;  %v3054_v45 = vld [vmem:[%s3711_s25 + $0x4] sm:$0xf]  ;;  %p208_p0 = scmp.ge.s32.totalorder %s211_s3, 2  }
  0xca   : > { %517 = vmatpush.bf16.msra.mxu2 %v2239_v5  ;;  %v2401_v5 = vld [vmem:[%s3711_s25 + $0x40] sm:$0xf]  ;;  %v2378_v44 = vor.u32 %v3057_v42, %v2377_v40  ;;  %v3055_v52 = vld [vmem:[%s3711_s25 + $0x4] sm:$0xf0]  ;;  %v2597_v42 = vld [vmem:[%s3608_s21 + $0x1f8] sm:$0xf0] }
  0xcb   : > { %536 = vmatpush.bf16.msra.mxu3 %v2303_v10  ;;  %478 = vmatpush.bf16.msra.mxu0 %v2243_v28  ;;  %v2402_v8 = vor.u32 %v3063_v7, %v2401_v5  ;;  %v2395_v10 = vld [vmem:[%s3711_s25 + $0x38] sm:$0xf0]  ;;  %v3179_v13 = vld [vmem:[%s4286_s9 + $0x28] sm:$0xff] (%p208_p0)  ;;  %v3170_v14 = vld [vmem:[%s4284_s7 + $0x20] sm:$0xff] (%p208_p0) }
  0xcc   : > { %497 = vmatpush.bf16.msra.mxu1 %v2307_v32  ;;  %v2398_v15 = vor.u32 %v3060_v9, %v2395_v10  ;;  %v306_v10 = vld [vmem:[%s3733_s29 + $0x10] sm:$0xff] }
  0xcd   : > { %518 = vmatmul.bf16.vlgmr.msra.gmra.mxu2 %v250_v21 }
  0xce   : > { %537 = vmatmul.bf16.vlgmr.msra.gmra.mxu3 %v262_v29 }
  0xcf   : > { %479 = vmatpush.bf16.msra.mxu0 %v2235_v36  ;;  %v2386_v36 = vor.u32 %v3059_v35, %v2385_v31 }
  0xd0   : > { %498 = vmatpush.bf16.msra.mxu1 %v2299_v39  ;;  %v2379_v39 = vld [vmem:[%s3711_s25 + $0x18] sm:$0xf0] }
  0xd1   : > { %v2382_v17 = vor.u32 %v3056_v38, %v2379_v39 }
  0xd2   : > { %480 = vmatmul.bf16.vlgmr.msra.gmra.mxu0 %v250_v21  ;;  %v2394_v21 = vor.u32 %v3061_v16, %v2393_v12 }
  0xd3   : > { %499 = vmatmul.bf16.vlgmr.msra.gmra.mxu1 %v262_v29  ;;  %741 = vmatpush.bf16.msrb.mxu0 %v2426_v53  ;;  %v3058_v29 = vld [vmem:[%s3711_s25 + $0x24] sm:$0xf] }
  0xd4   : > { %760 = vmatpush.bf16.msrb.mxu1 %v2430_v51  ;;  %v2390_v34 = vor.u32 %v3058_v29, %v2387_v30 }
  0xd7   : > { %742 = vmatpush.bf16.msrb.mxu0 %v2418_v59  ;;  %v309_v59 = vld [vmem:[%s3733_s29 + $0x28] sm:$0xff] }
  0xd8   : > { %761 = vmatpush.bf16.msrb.mxu1 %v2422_v57 }
  0xdb   : > { %743 = vmatpush.bf16.msrb.mxu0 %v2410_v2 }
  0xdc   : > { %762 = vmatpush.bf16.msrb.mxu1 %v2414_v0  ;;  %v304_v0 = vld [vmem:[%s3733_s29] sm:$0xff] }
  0xdd   : > { %523 = vmatmul.bf16.gmra.mxu2 %v251_v46 }
  0xde   : > { %542 = vmatmul.bf16.gmra.mxu3 %v263_v47 }
  0xdf   : > { %744 = vmatpush.bf16.msrb.mxu0 %v2402_v8  ;;  %v311_v8 = vld [vmem:[%s3733_s29 + $0x38] sm:$0xff] }
  0xe0   : > { %763 = vmatpush.bf16.msrb.mxu1 %v2406_v6 }
  0xe2   : > { %485 = vmatmul.bf16.gmra.mxu0 %v251_v46  ;;  %v2371_v46 = vld [vmem:[%s3711_s25 + $0x8] sm:$0xf0] }
  0xe3   : > { %504 = vmatmul.bf16.gmra.mxu1 %v263_v47  ;;  %745 = vmatpush.bf16.msrb.mxu0 %v2394_v21  ;;  %v2369_v47 = vld [vmem:[%s3711_s25] sm:$0xf]  ;;  %v2374_v51 = vor.u32 %v3054_v45, %v2371_v46  ;;  %v3099_v45 = vld [vmem:[%s3608_s21 + $0x1e4] sm:$0xf0] }
  0xe4   : > { %764 = vmatpush.bf16.msrb.mxu1 %v2398_v15  ;;  %v2370_v53 = vor.u32 %v3055_v52, %v2369_v47  ;;  %v3098_v47 = vld [vmem:[%s3608_s21 + $0x1e4] sm:$0xf]  ;;  %v2579_v52 = vld [vmem:[%s3608_s21 + $0x1d0] sm:$0xf] }
  0xe7   : > { %746 = vmatpush.bf16.msrb.mxu0 %v2386_v36  ;;  %v2595_v36 = vld [vmem:[%s3608_s21 + $0x1f0] sm:$0xf] }
  0xe8   : > { %765 = vmatpush.bf16.msrb.mxu1 %v2390_v34 }
  0xeb   : > { %747 = vmatpush.bf16.msrb.mxu0 %v2378_v44 }
  0xec   : > { %766 = vmatpush.bf16.msrb.mxu1 %v2382_v17  ;;  %v3100_v17 = vld [vmem:[%s3608_s21 + $0x1f4] sm:$0xf] }
  0xef   : > { %748 = vmatpush.bf16.msrb.mxu0 %v2370_v53  ;;  %v3097_v53 = vld [vmem:[%s3608_s21 + $0x1d4] sm:$0xf0] }
  0xf0   : > { %767 = vmatpush.bf16.msrb.mxu1 %v2374_v51  ;;  %v2600_v51 = vor.u32 %v3100_v17, %v2597_v42 }
  0xf4   : > { %1096 = vmatpush.bf16.msra.mxu1 %v2600_v51 }
 0x14f   : > { %v481_v50 = vpop.f32.mrf.mxu0 }
 0x150   : > { %v519_v28 = vpop.f32.mrf.mxu2  ;;  %v500_v57 = vpop.f32.mrf.mxu1  ;;  %v482_v7 = vadd.f32 %v481_v50, %v304_v0  ;;  %v2580_v0 = vor.u32 %v3097_v53, %v2579_v52 }
 0x151   : > { %v520_v32 = vadd.f32 %v519_v28, %v305_v20  ;;  %v538_v33 = vpop.f32.mrf.mxu3 }
 0x152   : > { %v501_v21 = vadd.f32 %v500_v57, %v482_v7 }
 0x153   : > { %v539_v37 = vadd.f32 %v538_v33, %v520_v32 }
 0x155   : > { %v2360_v41 = vmul.f32 -1.442695, %v539_v37  ;;  %v3101_v37 = vld [vmem:[%s3608_s21 + $0x1f4] sm:$0xf0] }
 0x157   : > { %3306 = vpow2.f32 %v2360_v41  ;;  %v483_v2 = vpop.f32.mrf.mxu0  ;;  %v2596_v41 = vor.u32 %v3101_v37, %v2595_v36 }
 0x158   : > { %v521_v60 = vpop.f32.mrf.mxu2  ;;  %v502_v12 = vpop.f32.mrf.mxu1  ;;  %v484_v28 = vadd.f32 %v483_v2, %v306_v10  ;;  %v2581_v2 = vld [vmem:[%s3608_s21 + $0x1d8] sm:$0xf0] }
 0x159   : > { %v522_v48 = vadd.f32 %v521_v60, %v307_v43  ;;  %v540_v49 = vpop.f32.mrf.mxu3  ;;  %v2587_v60 = vld [vmem:[%s3608_s21 + $0x1e0] sm:$0xf]  ;;  %1058 = vmatpush.bf16.msrb.mxu3 %v2596_v41 }
 0x15a   : > { %v503_v40 = vadd.f32 %v502_v12, %v484_v28  ;;  %v2588_v57 = vor.u32 %v3099_v45, %v2587_v60  ;;  %v310_v12 = vld [vmem:[%s3733_s29 + $0x30] sm:$0xff] }
 0x15b   : > { %v541_v54 = vadd.f32 %v540_v49, %v522_v48  ;;  %v2589_v48 = vld [vmem:[%s3608_s21 + $0x1e8] sm:$0xf0] }
 0x15d   : > { %v3307_v55 = vpop.eup %3306  ;;  %v2361_v56 = vmul.f32 -1.442695, %v541_v54  ;;  %1059 = vmatpush.bf16.msrb.mxu3 %v2588_v57 }
 0x15e   : > { %v3753_v58 = vadd.f32 1.0, %v3307_v55 }
 0x15f   : > { %3308 = vpow2.f32 %v2361_v56  ;;  %v486_v35 = vpop.f32.mrf.mxu0 }
 0x160   : > { %3310 = vrcp.f32 %v3753_v58  ;;  %v524_v61 = vpop.f32.mrf.mxu2  ;;  %v577_v32 = vand.u32 2147483647, %v3753_v58  ;;  %v579_v46 = vand.u32 2147483648, %v3753_v58  ;;  %v505_v50 = vpop.f32.mrf.mxu1  ;;  %vm573_vm8 = vweird.f32 %v3753_v58 }
 0x161   : > { %v525_v62 = vadd.f32 %v524_v61, %v309_v59  ;;  %v543_v63 = vpop.f32.mrf.mxu3  ;;  %v2592_v61 = vor.u32 %v3098_v47, %v2589_v48  ;;  %1060 = vmatpush.bf16.msrb.mxu3 %v2580_v0 }
 0x162   : > { %vm578_vm11 = vcmp.eq.f32.partialorder %v577_v32, 8.507059e+37 }
 0x163   : > { %v544_v1 = vadd.f32 %v543_v63, %v525_v62  ;;  %v580_v63 = vor.u32 1.1754944e-38, %v579_v46  ;;  %1097 = vmatpush.bf16.msra.mxu1 %v2592_v61  ;;  %v3094_v61 = vld [vmem:[%s3608_s21 + $0x1c4] sm:$0xf] }
 0x165   : > { %v3309_v3 = vpop.eup %3308  ;;  %v2362_v4 = vmul.f32 -1.442695, %v544_v1  ;;  %v3096_v1 = vld [vmem:[%s3608_s21 + $0x1d4] sm:$0xf] }
 0x166   : > { %v3758_v5 = vpop.eup %3310  ;;  %v3760_v6 = vadd.f32 1.0, %v3309_v3 }
 0x167   : > { %v569_v9 = vmul.f32 %v3758_v5, %v3753_v58  ;;  %3312 = vpow2.f32 %v2362_v4  ;;  %vm574_vm7 = vweird.f32 %v3758_v5  ;;  %v308_v4 = vld [vmem:[%s3733_s29 + $0x20] sm:$0xff] }
 0x168   : > { %3314 = vrcp.f32 %v3760_v6  ;;  %v526_v15 = vpop.f32.mrf.mxu2  ;;  %vm3789_vm9 = vmor %vm573_vm8, %vm574_vm7  ;;  %v592_v55 = vand.u32 2147483647, %v3760_v6  ;;  %v594_v56 = vand.u32 2147483648, %v3760_v6  ;;  %vm588_vm12 = vweird.f32 %v3760_v6 }
 0x169   : > { %v570_v16 = vsub.f32 1.0, %v569_v9  ;;  %v527_v20 = vadd.f32 %v526_v15, %v311_v8  ;;  %v545_v29 = vpop.f32.mrf.mxu3  ;;  %3316 = vtanh.f32 %v501_v21  ;;  %v488_v15 = vpop.f32.mrf.mxu0  ;;  %v2584_v21 = vor.u32 %v3096_v1, %v2581_v2  ;;  %v2563_v1 = vld [vmem:[%s3608_s21 + $0x1b0] sm:$0xf]  ;;  %v3093_v2 = vld [vmem:[%s3608_s21 + $0x1b4] sm:$0xf0] }
 0x16a   : > { %v595_v10 = vor.u32 1.1754944e-38, %v594_v56  ;;  %vm593_vm14 = vcmp.eq.f32.partialorder %v592_v55, 8.507059e+37 }
 0x16b   : > { %v546_v30 = vadd.f32 %v545_v29, %v527_v20  ;;  %v571_v31 = vmul.f32 %v3758_v5, %v570_v16  ;;  %v487_v29 = vadd.f32 %v486_v35, %v308_v4  ;;  %1098 = vmatpush.bf16.msra.mxu1 %v2584_v21  ;;  %v2564_v4 = vor.u32 %v3093_v2, %v2563_v1  ;;  %v3091_v21 = vld [vmem:[%s3608_s21 + $0x1a4] sm:$0xf0]  ;;  %v3074_v2 = vld [vmem:[%s3608_s21 + $0x124] sm:$0xf] }
 0x16d   : > { %v3313_v33 = vpop.eup %3312  ;;  %v2363_v34 = vmul.f32 -1.442695, %v546_v30  ;;  %v572_v44 = vadd.f32 %v3758_v5, %v571_v31 }
 0x16e   : > { %v3315_v38 = vpop.eup %3314  ;;  %v3771_v39 = vadd.f32 1.0, %v3313_v33  ;;  %v489_v33 = vadd.f32 %v488_v15, %v310_v12  ;;  %v2531_v12 = vld [vmem:[%s3608_s21 + $0x170] sm:$0xf]  ;;  %v3085_v15 = vld [vmem:[%s3608_s21 + $0x174] sm:$0xf0] }
 0x16f   : > { %v584_v43 = vmul.f32 %v3315_v38, %v3760_v6  ;;  %3318 = vpow2.f32 %v2363_v34  ;;  %v576_v58 = vsel %vm3789_vm9, %v3758_v5, %v572_v44  ;;  %vm589_vm10 = vweird.f32 %v3315_v38  ;;  %v3317_v62 = vpop.eup %3316  ;;  %v507_v34 = vpop.f32.mrf.mxu1 }
 0x170   : > { %3320 = vrcp.f32 %v3771_v39  ;;  %v581_v5 = vsel %vm578_vm11, %v580_v63, %v576_v58  ;;  %vm590_vm13 = vmor %vm588_vm12, %vm589_vm10  ;;  %v508_v41 = vadd.f32 %v507_v34, %v489_v33  ;;  %v609_v35 = vand.u32 2147483648, %v3771_v39  ;;  %v2571_v58 = vld [vmem:[%s3608_s21 + $0x1c0] sm:$0xf]  ;;  %v2573_v63 = vld [vmem:[%s3608_s21 + $0x1c8] sm:$0xf0] }
 0x171   : > { %v585_v49 = vsub.f32 1.0, %v584_v43  ;;  %3322 = vtanh.f32 %v503_v40  ;;  %v628_v6 = vmul.f32 %v3317_v62, %v581_v5  ;;  %v506_v40 = vadd.f32 %v505_v50, %v487_v29  ;;  %v2533_v5 = vld [vmem:[%s3608_s21 + $0x178] sm:$0xf0]  ;;  %v2557_v29 = vld [vmem:[%s3608_s21 + $0x1a8] sm:$0xf0] }
 0x172   : > { %vm603_vm6 = vweird.f32 %v3771_v39  ;;  %v607_v43 = vand.u32 2147483647, %v3771_v39  ;;  %v610_v48 = vor.u32 1.1754944e-38, %v609_v35  ;;  %v2576_v0 = vor.u32 %v3094_v61, %v2573_v63  ;;  %v2523_v33 = vld [vmem:[%s3608_s21 + $0x160] sm:$0xf] }
 0x173   : > { %v586_v59 = vmul.f32 %v3315_v38, %v585_v49  ;;  %v2501_v61 = vld [vmem:[%s3608_s21 + $0x138] sm:$0xf0]  ;;  %v2499_v63 = vld [vmem:[%s3608_s21 + $0x130] sm:$0xf] }
 0x174   : > { %vm608_vm9 = vcmp.eq.f32.partialorder %v607_v43, 8.507059e+37  ;;  %1099 = vmatpush.bf16.msra.mxu1 %v2576_v0  ;;  %v3080_v43 = vld [vmem:[%s3608_s21 + $0x154] sm:$0xf]  ;;  %v3077_v0 = vld [vmem:[%s3608_s21 + $0x134] sm:$0xf0] }
 0x175   : > { %v3319_v3 = vpop.eup %3318  ;;  %v587_v7 = vadd.f32 %v3315_v38, %v586_v59  ;;  %v3095_v59 = vld [vmem:[%s3608_s21 + $0x1c4] sm:$0xf0]  ;;  %v2500_v1 = vor.u32 %v3077_v0, %v2499_v63 }
 0x176   : > { %v3321_v8 = vpop.eup %3320  ;;  %v567_v9 = vadd.f32 1.0, %v3319_v3  ;;  %v2572_v62 = vor.u32 %v3095_v59, %v2571_v58  ;;  %v3092_v3 = vld [vmem:[%s3608_s21 + $0x1b4] sm:$0xf] }
 0x177   : > { %v591_v16 = vsel %vm590_vm13, %v3315_v38, %v587_v7  ;;  %v599_v20 = vmul.f32 %v3321_v8, %v3771_v39  ;;  %v3323_v28 = vpop.eup %3322  ;;  %vm604_vm15 = vweird.f32 %v3321_v8  ;;  %v2565_v7 = vld [vmem:[%s3608_s21 + $0x1b8] sm:$0xf0]  ;;  %v3076_v59 = vld [vmem:[%s3608_s21 + $0x134] sm:$0xf]  ;;  %vm796_vm13 = vcmp.lt.s32.totalorder %v3542_v11, 2 }
 0x178   : > { %3324 = vrcp.f32 %v567_v9  ;;  %v596_v30 = vsel %vm593_vm14, %v595_v10, %v591_v16  ;;  %vm605_vm7 = vmor %vm603_vm6, %vm604_vm15  ;;  %v624_v60 = vand.u32 2147483648, %v567_v9  ;;  %v622_v47 = vand.u32 2147483647, %v567_v9  ;;  %1061 = vmatpush.bf16.msrb.mxu3 %v2572_v62  ;;  %v2555_v16 = vld [vmem:[%s3608_s21 + $0x1a0] sm:$0xf] }
 0x179   : > { %v629_v31 = vmul.f32 %v3323_v28, %v596_v30  ;;  %v600_v32 = vsub.f32 1.0, %v599_v20  ;;  %3326 = vtanh.f32 %v506_v40  ;;  %vm618_vm10 = vweird.f32 %v567_v9  ;;  %v3090_v28 = vld [vmem:[%s3608_s21 + $0x1a4] sm:$0xf]  ;;  %v3089_v40 = vld [vmem:[%s3608_s21 + $0x194] sm:$0xf0] }
 0x17a   : > { %3328 = vtanh.f32 %v508_v41  ;;  %v625_v39 = vor.u32 1.1754944e-38, %v624_v60  ;;  %vm623_vm12 = vcmp.eq.f32.partialorder %v622_v47, 8.507059e+37  ;;  %v2532_v20 = vor.u32 %v3085_v15, %v2531_v12  ;;  %v2539_v47 = vld [vmem:[%s3608_s21 + $0x180] sm:$0xf]  ;;  %v2485_v12 = vld [vmem:[%s3608_s21 + $0x118] sm:$0xf0] }
 0x17b   : > { %v632_v36 = vpack.c.bf16 %v629_v31, %v628_v6  ;;  %v601_v37 = vmul.f32 %v3321_v8, %v600_v32  ;;  %v2556_v30 = vor.u32 %v3091_v21, %v2555_v16  ;;  %v2560_v6 = vor.u32 %v3090_v28, %v2557_v29  ;;  %v3082_v31 = vld [vmem:[%s3608_s21 + $0x164] sm:$0xf]  ;;  %v2525_v32 = vld [vmem:[%s3608_s21 + $0x168] sm:$0xf0]  ;;  %v2483_v15 = vld [vmem:[%s3608_s21 + $0x110] sm:$0xf] }
 0x17c   : > { %1062 = vmatpush.bf16.msrb.mxu3 %v2564_v4  ;;  %1039 = vmatpush.bf16.msrb.mxu2 %v2532_v20  ;;  %v2528_v34 = vor.u32 %v3082_v31, %v2525_v32  ;;  %v2504_v62 = vor.u32 %v3076_v59, %v2501_v61  ;;  %v2491_v4 = vld [vmem:[%s3608_s21 + $0x120] sm:$0xf]  ;;  %v3073_v20 = vld [vmem:[%s3608_s21 + $0x114] sm:$0xf0] }
 0x17d   : > { %749 = vmatmul.bf16.vlgmr.msrb.gmra.mxu0 %v632_v36  ;;  %768 = vmatmul.bf16.vlgmr.msrb.gmra.mxu1 %v632_v36  ;;  %v602_v17 = vadd.f32 %v3321_v8, %v601_v37  ;;  %v3083_v36 = vld [vmem:[%s3608_s21 + $0x164] sm:$0xf0]  ;;  %v2547_v37 = vld [vmem:[%s3608_s21 + $0x190] sm:$0xf]  ;;  %v2484_v28 = vor.u32 %v3073_v20, %v2483_v15  ;;  %v2475_v31 = vld [vmem:[%s3608_s21 + $0x100] sm:$0xf] }
 0x17e   : > { %v3325_v38 = vpop.eup %3324  ;;  %v2548_v41 = vor.u32 %v3089_v40, %v2547_v37  ;;  %v2684_v15 = vld [vmem:[%s3711_s25 + $0xf8] sm:$0xf0] }
 0x17f   : > { %v614_v42 = vmul.f32 %v3325_v38, %v567_v9  ;;  %v606_v45 = vsel %vm605_vm7, %v3321_v8, %v602_v17  ;;  %vm619_vm8 = vweird.f32 %v3325_v38  ;;  %v3327_v50 = vpop.eup %3326  ;;  %v2568_v8 = vor.u32 %v3092_v3, %v2565_v7  ;;  %v3084_v9 = vld [vmem:[%s3608_s21 + $0x174] sm:$0xf]  ;;  %v2493_v3 = vld [vmem:[%s3608_s21 + $0x128] sm:$0xf0] }
 0x180   : > { %v611_v51 = vsel %vm608_vm9, %v610_v48, %v606_v45  ;;  %vm620_vm11 = vmor %vm618_vm10, %vm619_vm8  ;;  %v3329_v53 = vpop.eup %3328  ;;  %v2536_v10 = vor.u32 %v3084_v9, %v2533_v5  ;;  %1063 = vmatpush.bf16.msrb.mxu3 %v2556_v30  ;;  %v3088_v17 = vld [vmem:[%s3608_s21 + $0x194] sm:$0xf]  ;;  %v2515_v45 = vld [vmem:[%s3608_s21 + $0x150] sm:$0xf]  ;;  %v2496_v7 = vor.u32 %v3074_v2, %v2493_v3 }
 0x181   : > { %v615_v44 = vsub.f32 1.0, %v614_v42  ;;  %v630_v55 = vmul.f32 %v3327_v50, %v611_v51  ;;  %1100 = vmatpush.bf16.msra.mxu1 %v2568_v8  ;;  %v2549_v42 = vld [vmem:[%s3608_s21 + $0x198] sm:$0xf0]  ;;  %v3086_v50 = vld [vmem:[%s3608_s21 + $0x184] sm:$0xf] }
 0x182   : > { %1077 = vmatpush.bf16.msra.mxu0 %v2536_v10  ;;  %v2552_v35 = vor.u32 %v3088_v17, %v2549_v42  ;;  %v2541_v51 = vld [vmem:[%s3608_s21 + $0x188] sm:$0xf0]  ;;  %v3075_v8 = vld [vmem:[%s3608_s21 + $0x124] sm:$0xf0]  ;;  %v3859_v9 = vld [vmem:[%s3852_s14] sm:$0x3] }
 0x183   : > { %v616_v46 = vmul.f32 %v3325_v38, %v615_v44  ;;  %v2517_v44 = vld [vmem:[%s3608_s21 + $0x158] sm:$0xf0]  ;;  %v2492_v5 = vor.u32 %v3075_v8, %v2491_v4  ;;  %v3072_v10 = vld [vmem:[%s3608_s21 + $0x114] sm:$0xf]  ;;  %v658_v21 = vperm.slane %v3859_v9, 1 }
 0x184   : > { %1064 = vmatpush.bf16.msrb.mxu3 %v2548_v41  ;;  %v2520_v60 = vor.u32 %v3080_v43, %v2517_v44  ;;  %v2488_v16 = vor.u32 %v3072_v10, %v2485_v12  ;;  %v3070_v30 = vld [vmem:[%s3608_s21 + $0x104] sm:$0xf]  ;;  %v3116_v12 = vld [vmem:[%s3711_s25 + $0xf4] sm:$0xf] }
 0x185   : > { %v617_v49 = vadd.f32 %v3325_v38, %v616_v46  ;;  %1101 = vmatpush.bf16.msra.mxu1 %v2560_v6  ;;  %v3081_v46 = vld [vmem:[%s3608_s21 + $0x154] sm:$0xf0]  ;;  %v2477_v6 = vld [vmem:[%s3608_s21 + $0x108] sm:$0xf0]  ;;  %v2687_v20 = vor.u32 %v3116_v12, %v2684_v15 }
 0x186   : > { %1078 = vmatpush.bf16.msra.mxu0 %v2528_v34  ;;  %v2516_v48 = vor.u32 %v3081_v46, %v2515_v45  ;;  %v3071_v34 = vld [vmem:[%s3608_s21 + $0x104] sm:$0xf0]  ;;  %v2468_v12 = vld [vmem:[%s3733_s29 + $0x58] sm:$0xff] }
 0x187   : > { %v621_v52 = vsel %vm620_vm11, %v3325_v38, %v617_v49  ;;  %v2524_v38 = vor.u32 %v3083_v36, %v2523_v33  ;;  %v3087_v49 = vld [vmem:[%s3608_s21 + $0x184] sm:$0xf0]  ;;  %v2480_v33 = vor.u32 %v3070_v30, %v2477_v6  ;;  %v2476_v36 = vor.u32 %v3071_v34, %v2475_v31  ;;  %v3114_v30 = vld [vmem:[%s3711_s25 + $0xe4] sm:$0xf]  ;;  %v2676_v6 = vld [vmem:[%s3711_s25 + $0xe8] sm:$0xf0] }
 0x188   : > { %v626_v54 = vsel %vm623_vm12, %v625_v39, %v621_v52  ;;  %v2540_v39 = vor.u32 %v3087_v49, %v2539_v47  ;;  %v2544_v52 = vor.u32 %v3086_v50, %v2541_v51  ;;  %v2674_v31 = vld [vmem:[%s3711_s25 + $0xe0] sm:$0xf] }
 0x189   : > { %v631_v56 = vmul.f32 %v3329_v53, %v626_v54  ;;  %1040 = vmatpush.bf16.msrb.mxu2 %v2524_v38  ;;  %1102 = vmatpush.bf16.msra.mxu1 %v2552_v35  ;;  %v3078_v53 = vld [vmem:[%s3608_s21 + $0x144] sm:$0xf]  ;;  %v2509_v54 = vld [vmem:[%s3608_s21 + $0x148] sm:$0xf0] }
 0x18a   : > { %1079 = vmatpush.bf16.msra.mxu0 %v2520_v60  ;;  %1065 = vmatpush.bf16.msrb.mxu3 %v2540_v39 }
 0x18b   : > { %v633_v57 = vpack.c.bf16 %v631_v56, %v630_v55  ;;  %v2507_v55 = vld [vmem:[%s3608_s21 + $0x140] sm:$0xf]  ;;  %v2512_v56 = vor.u32 %v3078_v53, %v2509_v54 }
 0x18d   : > { %754 = vmatmul.bf16.gmra.mxu0 %v633_v57  ;;  %773 = vmatmul.bf16.gmra.mxu1 %v633_v57  ;;  %v3079_v57 = vld [vmem:[%s3608_s21 + $0x144] sm:$0xf0] }
 0x18e   : > { %1041 = vmatpush.bf16.msrb.mxu2 %v2516_v48  ;;  %1103 = vmatpush.bf16.msra.mxu1 %v2544_v52  ;;  %v2508_v58 = vor.u32 %v3079_v57, %v2507_v55 }
 0x18f   : > { %1080 = vmatpush.bf16.msra.mxu0 %v2512_v56  ;;  %1327 = vmatpush.bf16.msra.mxu3 %v2687_v20  ;;  %v3102_v20 = vld [vmem:[%s3711_s25 + $0x84] sm:$0xf] }
 0x192   : > { %1042 = vmatpush.bf16.msrb.mxu2 %v2508_v58 }
 0x193   : > { %1081 = vmatpush.bf16.msra.mxu0 %v2504_v62 }
 0x196   : > { %1043 = vmatpush.bf16.msrb.mxu2 %v2500_v1 }
 0x197   : > { %1082 = vmatpush.bf16.msra.mxu0 %v2496_v7 }
 0x19a   : > { %1044 = vmatpush.bf16.msrb.mxu2 %v2492_v5 }
 0x19b   : > { %1083 = vmatpush.bf16.msra.mxu0 %v2488_v16  ;;  %v2682_v16 = vld [vmem:[%s3711_s25 + $0xf0] sm:$0xf] }
 0x19e   : > { %1045 = vmatpush.bf16.msrb.mxu2 %v2484_v28 }
 0x19f   : > { %1084 = vmatpush.bf16.msra.mxu0 %v2480_v33  ;;  %v3115_v33 = vld [vmem:[%s3711_s25 + $0xe4] sm:$0xf0] }
 0x1a0   : > { %v2675_v34 = vor.u32 %v3115_v33, %v2674_v31 }
 0x1a2   : > { %1046 = vmatpush.bf16.msrb.mxu2 %v2476_v36  ;;  %v3112_v36 = vld [vmem:[%s3711_s25 + $0xd4] sm:$0xf] }
 0x1fa   : > { %v769_v29 = vpop.f32.mrf.mxu1  ;;  %v3907_v5 = vpop.f32.mrf.mxu0 }
 0x1fb   : > { %v770_v32 = vadd.f32 %v769_v29, %v658_v21 }
 0x1fd   : > { %v3871_v37 = vadd.f32 %v3446_v18, %v770_v32  ;;  %v2679_v32 = vor.u32 %v3114_v30, %v2676_v6 }
 0x1ff   : > { %v788_v17 = vpack.c.bf16 %v3871_v37, %v3871_v37  ;;  %v792_v48 = vrot.slane %v3871_v37, 6  ;;  %1328 = vmatpush.bf16.msra.mxu3 %v2679_v32  ;;  %v3103_v32 = vld [vmem:[%s3711_s25 + $0x84] sm:$0xf0] }
 0x201   : > { %v825_v35 = vunpack.c.l.b16 %v788_v17 }
 0x202   : > { %v771_v40 = vpop.f32.mrf.mxu1  ;;  %v3909_v10 = vpop.f32.mrf.mxu0 }
 0x203   : > { %v772_v38 = vadd.f32 %v771_v40, %v658_v21  ;;  %v2668_v40 = vld [vmem:[%s3711_s25 + $0xd8] sm:$0xf0] }
 0x204   : > { %v2671_v17 = vor.u32 %v3112_v36, %v2668_v40 }
 0x205   : > { %v3874_v41 = vadd.f32 %v3442_v22, %v772_v38  ;;  %v2666_v38 = vld [vmem:[%s3711_s25 + $0xd0] sm:$0xf] }
 0x206   : > { %1329 = vmatpush.bf16.msra.mxu3 %v2671_v17  ;;  %v2470_v17 = vld [vmem:[%s3733_s29 + $0x68] sm:$0xff] }
 0x207   : > { %v789_v42 = vpack.c.bf16 %v3874_v41, %v3874_v41  ;;  %v793_v46 = vrot.slane %v3874_v41, 6 }
 0x209   : > { %v826_v43 = vunpack.c.l.b16 %v789_v42  ;;  %v799_v51 = vsel %vm796_vm13, %v792_v48, %v793_v46  ;;  %v3113_v42 = vld [vmem:[%s3711_s25 + $0xd4] sm:$0xf0] }
 0x20a   : > { %v774_v44 = vpop.f32.mrf.mxu1  ;;  %v806_v55 = vpack.c.bf16 %v799_v51, %v799_v51  ;;  %v3915_v28 = vpop.f32.mrf.mxu0  ;;  %v2652_v51 = vld [vmem:[%s3711_s25 + $0xb8] sm:$0xf0] }
 0x20b   : > { %v829_v60 = vpack.c.b16 %v826_v43, %v825_v35  ;;  %v775_v45 = vadd.f32 %v774_v44, %v658_v21  ;;  %v2667_v35 = vor.u32 %v3113_v42, %v2666_v38  ;;  %v3110_v44 = vld [vmem:[%s3711_s25 + $0xc4] sm:$0xf] }
 0x20c   : > { %v814_v59 = vunpack.c.l.b16 %v806_v55 }
 0x20d   : > { %1066 = vmatmul.bf16.vlgmr.msrb.gmra.mxu3 %v829_v60  ;;  %1104 = vmatmul.bf16.vlgmr.msra.gmra.mxu1 %v829_v60  ;;  %v3881_v18 = vadd.f32 %v3438_v19, %v775_v45  ;;  %v2660_v60 = vld [vmem:[%s3711_s25 + $0xc8] sm:$0xf0]  ;;  %v2658_v45 = vld [vmem:[%s3711_s25 + $0xc0] sm:$0xf] }
 0x20f   : > { %v790_v50 = vpack.c.bf16 %v3881_v18, %v3881_v18  ;;  %v794_v61 = vrot.slane %v3881_v18, 6 }
 0x211   : > { %v827_v52 = vunpack.c.l.b16 %v790_v50  ;;  %v798_v63 = vsel %vm796_vm13, %v793_v46, %v794_v61  ;;  %v2663_v46 = vor.u32 %v3110_v44, %v2660_v60  ;;  %v3108_v50 = vld [vmem:[%s3711_s25 + $0xb4] sm:$0xf] }
 0x212   : > { %v776_v22 = vpop.f32.mrf.mxu1  ;;  %v803_v1 = vsel %vm200_vm3, %v798_v63, 0.0  ;;  %v3925_v43 = vpop.f32.mrf.mxu0 }
 0x213   : > { %v777_v47 = vadd.f32 %v776_v22, %v658_v21  ;;  %v807_v3 = vpack.c.bf16 %v803_v1, %v803_v1  ;;  %v3117_v21 = vld [vmem:[%s3711_s25 + $0xf4] sm:$0xf0]  ;;  %v3111_v22 = vld [vmem:[%s3711_s25 + $0xc4] sm:$0xf0]  ;;  %1330 = vmatpush.bf16.msra.mxu3 %v2663_v46  ;;  %v2636_v1 = vld [vmem:[%s3711_s25 + $0x98] sm:$0xf0] }
 0x214   : > { %v2683_v29 = vor.u32 %v3117_v21, %v2682_v16  ;;  %v2628_v21 = vld [vmem:[%s3711_s25 + $0x88] sm:$0xf0] }
 0x215   : > { %v3887_v49 = vadd.f32 %v3434_v23, %v777_v47  ;;  %v815_v7 = vunpack.c.l.b16 %v807_v3  ;;  %v2659_v47 = vor.u32 %v3111_v22, %v2658_v45  ;;  %v2631_v31 = vor.u32 %v3102_v20, %v2628_v21 }
 0x216   : > { %1308 = vmatpush.bf16.msra.mxu2 %v2683_v29  ;;  %v2626_v29 = vld [vmem:[%s3711_s25 + $0x80] sm:$0xf] }
 0x217   : > { %v795_v19 = vrot.slane %v3887_v49, 6  ;;  %v791_v39 = vpack.c.bf16 %v3887_v49, %v3887_v49  ;;  %v2627_v33 = vor.u32 %v3103_v32, %v2626_v29  ;;  %v2854_v29 = vld [vmem:[%s3608_s21 + $0x2f8] sm:$0xf0]  ;;  %v3146_v32 = vld [vmem:[%s3608_s21 + $0x2e4] sm:$0xf] }
 0x219   : > { %v828_v53 = vunpack.c.l.b16 %v791_v39  ;;  %v800_v54 = vsel %vm796_vm13, %v795_v19, %v792_v48  ;;  %v797_v0 = vsel %vm796_vm13, %v794_v61, %v795_v19  ;;  %v2650_v19 = vld [vmem:[%s3711_s25 + $0xb0] sm:$0xf]  ;;  %v2655_v39 = vor.u32 %v3108_v50, %v2652_v51  ;;  %v3107_v61 = vld [vmem:[%s3711_s25 + $0xa4] sm:$0xf0]  ;;  %v2465_v50 = vld [vmem:[%s3733_s29 + $0x40] sm:$0xff] }
 0x21a   : > { %v801_v23 = vsel %vm198_vm2, %v800_v54, 0.0  ;;  %v808_v2 = vpack.c.bf16 %v797_v0, %v797_v0  ;;  %1309 = vmatpush.bf16.msra.mxu2 %v2675_v34  ;;  %v3104_v0 = vld [vmem:[%s3711_s25 + $0x94] sm:$0xf] }
 0x21b   : > { %v830_v56 = vpack.c.b16 %v828_v53, %v827_v52  ;;  %v805_v57 = vpack.c.bf16 %v801_v23, %v801_v23  ;;  %v3109_v52 = vld [vmem:[%s3711_s25 + $0xb4] sm:$0xf0]  ;;  %v2466_v53 = vld [vmem:[%s3733_s29 + $0x48] sm:$0xff]  ;;  %1331 = vmatpush.bf16.msra.mxu3 %v2655_v39  ;;  %v3106_v23 = vld [vmem:[%s3711_s25 + $0xa4] sm:$0xf] }
 0x21c   : > { %v816_v4 = vunpack.c.l.b16 %v808_v2  ;;  %v2651_v54 = vor.u32 %v3109_v52, %v2650_v19  ;;  %v2634_v2 = vld [vmem:[%s3711_s25 + $0x90] sm:$0xf]  ;;  %v2472_v19 = vld [vmem:[%s3733_s29 + $0x78] sm:$0xff] }
 0x21d   : > { %1071 = vmatmul.bf16.gmra.mxu3 %v830_v56  ;;  %1109 = vmatmul.bf16.gmra.mxu1 %v830_v56  ;;  %v813_v58 = vunpack.c.l.b16 %v805_v57  ;;  %v2644_v56 = vld [vmem:[%s3711_s25 + $0xa8] sm:$0xf0]  ;;  %v2642_v57 = vld [vmem:[%s3711_s25 + $0xa0] sm:$0xf]  ;;  %v2467_v52 = vld [vmem:[%s3733_s29 + $0x50] sm:$0xff] }
 0x21e   : > { %v818_v8 = vpack.c.b16 %v816_v4, %v815_v7  ;;  %1310 = vmatpush.bf16.msra.mxu2 %v2667_v35  ;;  %v2639_v4 = vor.u32 %v3104_v0, %v2636_v1  ;;  %v3105_v7 = vld [vmem:[%s3711_s25 + $0x94] sm:$0xf0] }
 0x21f   : > { %v817_v62 = vpack.c.b16 %v814_v59, %v813_v58  ;;  %v2647_v59 = vor.u32 %v3106_v23, %v2644_v56  ;;  %v2635_v15 = vor.u32 %v3105_v7, %v2634_v2  ;;  %v2852_v2 = vld [vmem:[%s3608_s21 + $0x2f0] sm:$0xf] }
 0x221   : > { %1047 = vmatmul.bf16.vlgmr.msrb.gmra.mxu2 %v817_v62  ;;  %1085 = vmatmul.bf16.vlgmr.msra.gmra.mxu0 %v817_v62  ;;  %v2643_v62 = vor.u32 %v3107_v61, %v2642_v57 }
 0x222   : > { %1311 = vmatpush.bf16.msra.mxu2 %v2659_v47  ;;  %1332 = vmatpush.bf16.msra.mxu3 %v2647_v59 }
 0x226   : > { %1312 = vmatpush.bf16.msra.mxu2 %v2651_v54  ;;  %1333 = vmatpush.bf16.msra.mxu3 %v2639_v4 }
 0x22a   : > { %1313 = vmatpush.bf16.msra.mxu2 %v2643_v62  ;;  %1334 = vmatpush.bf16.msra.mxu3 %v2631_v31 }
 0x22e   : > { %1314 = vmatpush.bf16.msra.mxu2 %v2635_v15 }
 0x231   : > { %1052 = vmatmul.bf16.gmra.mxu2 %v818_v8  ;;  %1090 = vmatmul.bf16.gmra.mxu0 %v818_v8 }
 0x232   : > { %1315 = vmatpush.bf16.msra.mxu2 %v2627_v33  ;;  %v2846_v33 = vld [vmem:[%s3608_s21 + $0x2e8] sm:$0xf0] }
 0x28a   : > { %v1105_v48 = vpop.f32.mrf.mxu1 }
 0x290   : > { %v1067_v42 = vpop.f32.mrf.mxu3 }
 0x292   : > { %v1107_v8 = vpop.f32.mrf.mxu1 }
 0x298   : > { %v1069_v54 = vpop.f32.mrf.mxu3 }
 0x29a   : > { %v1110_v35 = vpop.f32.mrf.mxu1 }
 0x29e   : > { %v1086_v55 = vpop.f32.mrf.mxu0 }
 0x29f   : > { %v1087_v58 = vadd.f32 %v2466_v53, %v1086_v55 }
 0x2a1   : > { %v1106_v63 = vadd.f32 %v1105_v48, %v1087_v58 }
 0x2a2   : > { %v1112_v57 = vpop.f32.mrf.mxu1 }
 0x2a3   : > { %v2601_v3 = vmul.f32 -1.442695, %v1106_v63 }
 0x2a4   : > { %v1048_v30 = vpop.f32.mrf.mxu2 }
 0x2a5   : > { %3330 = vpow2.f32 %v2601_v3  ;;  %v1049_v23 = vadd.f32 %v2465_v50, %v1048_v30  ;;  %v3149_v3 = vld [vmem:[%s3608_s21 + $0x2f4] sm:$0xf0]  ;;  %v2844_v30 = vld [vmem:[%s3608_s21 + $0x2e0] sm:$0xf] }
 0x2a6   : > { %v1088_v16 = vpop.f32.mrf.mxu0  ;;  %v2853_v15 = vor.u32 %v3149_v3, %v2852_v2 }
 0x2a7   : > { %v1089_v6 = vadd.f32 %v2468_v12, %v1088_v16  ;;  %v1068_v63 = vadd.f32 %v1067_v42, %v1049_v23  ;;  %v3148_v16 = vld [vmem:[%s3608_s21 + $0x2f4] sm:$0xf] }
 0x2a8   : > { %1625 = vmatpush.bf16.msrb.mxu1 %v2853_v15 }
 0x2a9   : > { %v1108_v34 = vadd.f32 %v1107_v8, %v1089_v6  ;;  %v3147_v6 = vld [vmem:[%s3608_s21 + $0x2e4] sm:$0xf0] }
 0x2ab   : > { %v3331_v36 = vpop.eup %3330  ;;  %v2602_v40 = vmul.f32 -1.442695, %v1108_v34 }
 0x2ac   : > { %v3949_v38 = vadd.f32 1.0, %v3331_v36  ;;  %v1050_v45 = vpop.f32.mrf.mxu2  ;;  %v2836_v36 = vld [vmem:[%s3608_s21 + $0x2d0] sm:$0xf] }
 0x2ad   : > { %3332 = vpow2.f32 %v2602_v40  ;;  %v1051_v58 = vadd.f32 %v2467_v52, %v1050_v45  ;;  %v3145_v40 = vld [vmem:[%s3608_s21 + $0x2d4] sm:$0xf0]  ;;  %v3144_v52 = vld [vmem:[%s3608_s21 + $0x2d4] sm:$0xf] }
 0x2ae   : > { %3334 = vrcp.f32 %v3949_v38  ;;  %v1091_v44 = vpop.f32.mrf.mxu0  ;;  %v1144_v12 = vand.u32 2147483647, %v3949_v38  ;;  %v1146_v31 = vand.u32 2147483648, %v3949_v38  ;;  %vm1140_vm15 = vweird.f32 %v3949_v38 }
 0x2af   : > { %v1092_v60 = vadd.f32 %v2470_v17, %v1091_v44  ;;  %v1070_v7 = vadd.f32 %v1069_v54, %v1051_v58  ;;  %v2845_v44 = vor.u32 %v3147_v6, %v2844_v30  ;;  %v2837_v50 = vor.u32 %v3145_v40, %v2836_v36  ;;  %v2471_v58 = vld [vmem:[%s3733_s29 + $0x70] sm:$0xff] }
 0x2b0   : > { %vm1145_vm8 = vcmp.eq.f32.partialorder %v1144_v12, 8.507059e+37 }
 0x2b1   : > { %v1111_v46 = vadd.f32 %v1110_v35, %v1092_v60  ;;  %v2857_v35 = vor.u32 %v3148_v16, %v2854_v29  ;;  %v1072_v60 = vpop.f32.mrf.mxu3  ;;  %1626 = vmatpush.bf16.msrb.mxu1 %v2845_v44 }
 0x2b3   : > { %v3333_v22 = vpop.eup %3332  ;;  %v2603_v47 = vmul.f32 -1.442695, %v1111_v46  ;;  %1663 = vmatpush.bf16.msrb.mxu3 %v2857_v35 }
 0x2b4   : > { %v3953_v48 = vpop.eup %3334  ;;  %v3956_v51 = vadd.f32 1.0, %v3333_v22  ;;  %v3964_v0 = vpop.f32.mrf.mxu2  ;;  %v1147_v22 = vor.u32 1.1754944e-38, %v1146_v31 }
 0x2b5   : > { %v1136_v39 = vmul.f32 %v3953_v48, %v3949_v38  ;;  %3336 = vpow2.f32 %v2603_v47  ;;  %vm1141_vm14 = vweird.f32 %v3953_v48  ;;  %v2849_v47 = vor.u32 %v3146_v32, %v2846_v33  ;;  %1627 = vmatpush.bf16.msrb.mxu1 %v2837_v50 }
 0x2b6   : > { %3338 = vrcp.f32 %v3956_v51  ;;  %v1093_v53 = vpop.f32.mrf.mxu0  ;;  %vm3987_vm6 = vmor %vm1140_vm15, %vm1141_vm14  ;;  %v1161_v42 = vand.u32 2147483648, %v3956_v51  ;;  %v1159_v46 = vand.u32 2147483647, %v3956_v51  ;;  %vm1155_vm9 = vweird.f32 %v3956_v51 }
 0x2b7   : > { %v1137_v55 = vsub.f32 1.0, %v1136_v39  ;;  %v1094_v56 = vadd.f32 %v2472_v19, %v1093_v53  ;;  %v2838_v53 = vld [vmem:[%s3608_s21 + $0x2d8] sm:$0xf0]  ;;  %1664 = vmatpush.bf16.msrb.mxu3 %v2849_v47 }
 0x2b8   : > { %vm1160_vm11 = vcmp.eq.f32.partialorder %v1159_v46, 8.507059e+37 }
 0x2b9   : > { %v1113_v59 = vadd.f32 %v1112_v57, %v1094_v56  ;;  %v1138_v61 = vmul.f32 %v3953_v48, %v1137_v55  ;;  %v1162_v56 = vor.u32 1.1754944e-38, %v1161_v42 }
 0x2bb   : > { %v3337_v62 = vpop.eup %3336  ;;  %v2604_v1 = vmul.f32 -1.442695, %v1113_v59  ;;  %v1139_v21 = vadd.f32 %v3953_v48, %v1138_v61 }
 0x2bc   : > { %v3339_v4 = vpop.eup %3338  ;;  %v3968_v8 = vadd.f32 1.0, %v3337_v62  ;;  %v1055_v59 = vpop.f32.mrf.mxu2 }
 0x2bd   : > { %v1151_v20 = vmul.f32 %v3339_v4, %v3956_v51  ;;  %3340 = vpow2.f32 %v2604_v1  ;;  %v1143_v38 = vsel %vm3987_vm6, %v3953_v48, %v1139_v21  ;;  %vm1156_vm7 = vweird.f32 %v3339_v4  ;;  %v2469_v48 = vld [vmem:[%s3733_s29 + $0x60] sm:$0xff]  ;;  %v1074_v21 = vpop.f32.mrf.mxu3 }
 0x2be   : > { %3342 = vrcp.f32 %v3968_v8  ;;  %v1148_v23 = vsel %vm1145_vm8, %v1147_v22, %v1143_v38  ;;  %vm1157_vm10 = vmor %vm1155_vm9, %vm1156_vm7  ;;  %v2841_v51 = vor.u32 %v3144_v52, %v2838_v53  ;;  %v1054_v2 = vadd.f32 %v2469_v48, %v3964_v0  ;;  %v3142_v52 = vld [vmem:[%s3608_s21 + $0x2c4] sm:$0xf] }
 0x2bf   : > { %3344 = vtanh.f32 %v1068_v63  ;;  %v1152_v34 = vsub.f32 1.0, %v1151_v20  ;;  %v1056_v15 = vadd.f32 %v2471_v58, %v1055_v59  ;;  %v1176_v32 = vand.u32 2147483648, %v3968_v8  ;;  %v2822_v58 = vld [vmem:[%s3608_s21 + $0x2b8] sm:$0xf0] }
 0x2c0   : > { %3346 = vtanh.f32 %v1070_v7  ;;  %1665 = vmatpush.bf16.msrb.mxu3 %v2841_v51  ;;  %vm1170_vm13 = vweird.f32 %v3968_v8  ;;  %v1174_v0 = vand.u32 2147483647, %v3968_v8  ;;  %v3133_v51 = vld [vmem:[%s3608_s21 + $0x274] sm:$0xf0] }
 0x2c1   : > { %v1153_v45 = vmul.f32 %v3339_v4, %v1152_v34  ;;  %v1075_v30 = vadd.f32 %v1074_v21, %v1056_v15  ;;  %v1177_v42 = vor.u32 1.1754944e-38, %v1176_v32  ;;  %v3138_v15 = vld [vmem:[%s3608_s21 + $0x2a4] sm:$0xf]  ;;  %v3137_v32 = vld [vmem:[%s3608_s21 + $0x294] sm:$0xf0] }
 0x2c2   : > { %vm1175_vm6 = vcmp.eq.f32.partialorder %v1174_v0, 8.507059e+37  ;;  %v3130_v21 = vld [vmem:[%s3608_s21 + $0x264] sm:$0xf] }
 0x2c3   : > { %v3341_v19 = vpop.eup %3340  ;;  %v1154_v39 = vadd.f32 %v3339_v4, %v1153_v45 }
 0x2c4   : > { %v3343_v54 = vpop.eup %3342  ;;  %v1134_v55 = vadd.f32 1.0, %v3341_v19  ;;  %v2828_v19 = vld [vmem:[%s3608_s21 + $0x2c0] sm:$0xf] }
 0x2c5   : > { %v3345_v57 = vpop.eup %3344  ;;  %v1158_v61 = vsel %vm1157_vm10, %v3339_v4, %v1154_v39  ;;  %v1166_v62 = vmul.f32 %v3343_v54, %v3968_v8  ;;  %v1073_v4 = vadd.f32 %v1072_v60, %v1054_v2  ;;  %vm1171_vm12 = vweird.f32 %v3343_v54  ;;  %v3143_v39 = vld [vmem:[%s3608_s21 + $0x2c4] sm:$0xf0]  ;;  %v2812_v2 = vld [vmem:[%s3608_s21 + $0x2a0] sm:$0xf] }
 0x2c6   : > { %v3347_v63 = vpop.eup %3346  ;;  %3348 = vrcp.f32 %v1134_v55  ;;  %v1163_v1 = vsel %vm1160_vm11, %v1162_v56, %v1158_v61  ;;  %v1195_v3 = vmul.f32 %v3345_v57, %v1148_v23  ;;  %vm1172_vm14 = vmor %vm1170_vm13, %vm1171_vm12  ;;  %v1191_v34 = vand.u32 2147483648, %v1134_v55  ;;  %v3141_v23 = vld [vmem:[%s3608_s21 + $0x2b4] sm:$0xf0]  ;;  %v3140_v56 = vld [vmem:[%s3608_s21 + $0x2b4] sm:$0xf] }
 0x2c7   : > { %v1196_v7 = vmul.f32 %v3347_v63, %v1163_v1  ;;  %v1167_v12 = vsub.f32 1.0, %v1166_v62  ;;  %3350 = vtanh.f32 %v1073_v4  ;;  %v1189_v17 = vand.u32 2147483647, %v1134_v55  ;;  %v3132_v61 = vld [vmem:[%s3608_s21 + $0x274] sm:$0xf] }
 0x2c8   : > { %3352 = vtanh.f32 %v1075_v30  ;;  %vm1185_vm7 = vweird.f32 %v1134_v55  ;;  %v1192_v60 = vor.u32 1.1754944e-38, %v1191_v34  ;;  %v2829_v53 = vor.u32 %v3143_v39, %v2828_v19  ;;  %v2790_v62 = vld [vmem:[%s3608_s21 + $0x278] sm:$0xf0]  ;;  %v2788_v63 = vld [vmem:[%s3608_s21 + $0x270] sm:$0xf] }
 0x2c9   : > { %v1199_v16 = vpack.c.bf16 %v1196_v7, %v1195_v3  ;;  %v1168_v20 = vmul.f32 %v3343_v54, %v1167_v12  ;;  %vm1190_vm9 = vcmp.eq.f32.partialorder %v1189_v17, 8.507059e+37  ;;  %v2825_v59 = vor.u32 %v3140_v56, %v2822_v58  ;;  %v3139_v3 = vld [vmem:[%s3608_s21 + $0x2a4] sm:$0xf0]  ;;  %v2782_v4 = vld [vmem:[%s3608_s21 + $0x268] sm:$0xf0] }
 0x2ca   : > { %1628 = vmatpush.bf16.msrb.mxu1 %v2829_v53  ;;  %v2793_v1 = vor.u32 %v3132_v61, %v2790_v62  ;;  %v2789_v7 = vor.u32 %v3133_v51, %v2788_v63  ;;  %v2813_v12 = vor.u32 %v3139_v3, %v2812_v2  ;;  %v2785_v30 = vor.u32 %v3130_v21, %v2782_v4  ;;  %v3136_v34 = vld [vmem:[%s3608_s21 + $0x294] sm:$0xf]  ;;  %v3126_v19 = vld [vmem:[%s3608_s21 + $0x244] sm:$0xf]  ;;  %v2766_v39 = vld [vmem:[%s3608_s21 + $0x248] sm:$0xf0] }
 0x2cb   : > { %1316 = vmatmul.bf16.vlgmr.msra.gmra.mxu2 %v1199_v16  ;;  %1335 = vmatmul.bf16.vlgmr.msra.gmra.mxu3 %v1199_v16  ;;  %v1169_v6 = vadd.f32 %v3343_v54, %v1168_v20  ;;  %v2814_v16 = vld [vmem:[%s3608_s21 + $0x2a8] sm:$0xf0]  ;;  %v3128_v17 = vld [vmem:[%s3608_s21 + $0x254] sm:$0xf]  ;;  %v2769_v53 = vor.u32 %v3126_v19, %v2766_v39  ;;  %v3125_v58 = vld [vmem:[%s3608_s21 + $0x234] sm:$0xf0] }
 0x2cc   : > { %v3349_v29 = vpop.eup %3348  ;;  %1644 = vmatpush.bf16.msrb.mxu2 %v2793_v1  ;;  %v2817_v20 = vor.u32 %v3138_v15, %v2814_v16  ;;  %1606 = vmatpush.bf16.msrb.mxu0 %v2789_v7  ;;  %v4048_v61 = vperm.slane %v3859_v9, 0  ;;  %v2623_v62 = vld [vmem:[%s3852_s14 + $0x2] sm:$0x3]  ;;  %v3122_v63 = vld [vmem:[%s3608_s21 + $0x224] sm:$0xf]  ;;  %vm1363_vm10 = vcmp.lt.s32.totalorder %v3542_v11, 4 }
 0x2cd   : > { %v1181_v31 = vmul.f32 %v3349_v29, %v1134_v55  ;;  %v1173_v36 = vsel %vm1172_vm14, %v3343_v54, %v1169_v6  ;;  %vm1186_vm15 = vweird.f32 %v3349_v29  ;;  %v3351_v8 = vpop.eup %3350  ;;  %v2830_v54 = vld [vmem:[%s3608_s21 + $0x2c8] sm:$0xf0]  ;;  %v2820_v55 = vld [vmem:[%s3608_s21 + $0x2b0] sm:$0xf]  ;;  %v3131_v6 = vld [vmem:[%s3608_s21 + $0x264] sm:$0xf0] }
 0x2ce   : > { %v1178_v44 = vsel %vm1175_vm6, %v1177_v42, %v1173_v36  ;;  %vm1187_vm8 = vmor %vm1185_vm7, %vm1186_vm15  ;;  %v3353_v45 = vpop.eup %3352  ;;  %v2833_v48 = vor.u32 %v3142_v52, %v2830_v54  ;;  %v2821_v57 = vor.u32 %v3141_v23, %v2820_v55  ;;  %v2806_v36 = vld [vmem:[%s3608_s21 + $0x298] sm:$0xf0]  ;;  %v2764_v52 = vld [vmem:[%s3608_s21 + $0x240] sm:$0xf]  ;;  %v4054_v2 = vperm.slane %v2623_v62, 0 }
 0x2cf   : > { %v1182_v33 = vsub.f32 1.0, %v1181_v31  ;;  %v1197_v22 = vmul.f32 %v3351_v8, %v1178_v44  ;;  %v2804_v31 = vld [vmem:[%s3608_s21 + $0x290] sm:$0xf]  ;;  %v2774_v42 = vld [vmem:[%s3608_s21 + $0x258] sm:$0xf0]  ;;  %v3171_v11 = vld [vmem:[%s4284_s7 + $0x28] sm:$0xff] (%p208_p0) }
 0x2d0   : > { %1666 = vmatpush.bf16.msrb.mxu3 %v2833_v48  ;;  %1629 = vmatpush.bf16.msrb.mxu1 %v2821_v57  ;;  %v2777_v44 = vor.u32 %v3128_v17, %v2774_v42  ;;  %v2796_v8 = vld [vmem:[%s3608_s21 + $0x280] sm:$0xf]  ;;  %v3127_v54 = vld [vmem:[%s3608_s21 + $0x244] sm:$0xf0]  ;;  %v3124_v55 = vld [vmem:[%s3608_s21 + $0x234] sm:$0xf] }
 0x2d1   : > { %v1183_v40 = vmul.f32 %v3349_v29, %v1182_v33  ;;  %v2805_v33 = vor.u32 %v3137_v32, %v2804_v31  ;;  %1645 = vmatpush.bf16.msrb.mxu2 %v2785_v30  ;;  %v2765_v48 = vor.u32 %v3127_v54, %v2764_v52  ;;  %v2758_v23 = vld [vmem:[%s3608_s21 + $0x238] sm:$0xf0]  ;;  %v2756_v57 = vld [vmem:[%s3608_s21 + $0x230] sm:$0xf]  ;;  %v2750_v1 = vld [vmem:[%s3608_s21 + $0x228] sm:$0xf0] }
 0x2d2   : > { %v2761_v56 = vor.u32 %v3124_v55, %v2758_v23  ;;  %v2748_v51 = vld [vmem:[%s3608_s21 + $0x220] sm:$0xf]  ;;  %v2753_v3 = vor.u32 %v3122_v63, %v2750_v1  ;;  %v3123_v7 = vld [vmem:[%s3608_s21 + $0x224] sm:$0xf0]  ;;  %v3120_v16 = vld [vmem:[%s3608_s21 + $0x214] sm:$0xf] }
 0x2d3   : > { %v1184_v35 = vadd.f32 %v3349_v29, %v1183_v40  ;;  %v2809_v40 = vor.u32 %v3136_v34, %v2806_v36  ;;  %v2749_v15 = vor.u32 %v3123_v7, %v2748_v51  ;;  %v2740_v9 = vld [vmem:[%s3608_s21 + $0x210] sm:$0xf]  ;;  %v3121_v4 = vld [vmem:[%s3608_s21 + $0x214] sm:$0xf0]  ;;  %v3118_v34 = vld [vmem:[%s3608_s21 + $0x204] sm:$0xf] }
 0x2d4   : > { %1667 = vmatpush.bf16.msrb.mxu3 %v2825_v59  ;;  %1630 = vmatpush.bf16.msrb.mxu1 %v2813_v12  ;;  %v2757_v59 = vor.u32 %v3125_v58, %v2756_v57  ;;  %v751_v12 = vadd.f32 %v3907_v5, %v4048_v61  ;;  %v2741_v30 = vor.u32 %v3121_v4, %v2740_v9  ;;  %v2734_v36 = vld [vmem:[%s3608_s21 + $0x208] sm:$0xf0]  ;;  %v3119_v42 = vld [vmem:[%s3608_s21 + $0x204] sm:$0xf0] }
 0x2d5   : > { %v1188_v38 = vsel %vm1187_vm8, %v3349_v29, %v1184_v35  ;;  %v2780_v29 = vld [vmem:[%s3608_s21 + $0x260] sm:$0xf]  ;;  %v2772_v35 = vld [vmem:[%s3608_s21 + $0x250] sm:$0xf]  ;;  %1646 = vmatpush.bf16.msrb.mxu2 %v2777_v44  ;;  %v2737_v17 = vor.u32 %v3118_v34, %v2734_v36  ;;  %v3165_v36 = vld [vmem:[%s3711_s25 + $0x174] sm:$0xf0] }
 0x2d6   : > { %v1193_v46 = vsel %vm1190_vm9, %v1192_v60, %v1188_v38  ;;  %v2781_v0 = vor.u32 %v3131_v6, %v2780_v29  ;;  %v3129_v60 = vld [vmem:[%s3608_s21 + $0x254] sm:$0xf0]  ;;  %v3135_v38 = vld [vmem:[%s3608_s21 + $0x284] sm:$0xf0]  ;;  %v1225_v29 = vperm.slane %v2623_v62, 1  ;;  %v779_v32 = vadd.f32 %v3430_v27, %v751_v12 }
 0x2d7   : > { %v1198_v47 = vmul.f32 %v3353_v45, %v1193_v46  ;;  %v2773_v45 = vor.u32 %v3129_v60, %v2772_v35  ;;  %v2797_v46 = vor.u32 %v3135_v38, %v2796_v8  ;;  %v753_v35 = vadd.f32 %v3909_v10, %v4048_v61  ;;  %v2939_v34 = vld [vmem:[%s3711_s25 + $0x170] sm:$0xf] }
 0x2d8   : > { %1668 = vmatpush.bf16.msrb.mxu3 %v2817_v20  ;;  %1607 = vmatpush.bf16.msrb.mxu0 %v2781_v0  ;;  %v2742_v20 = vld [vmem:[%s3608_s21 + $0x218] sm:$0xf0] }
 0x2d9   : > { %v1200_v50 = vpack.c.bf16 %v1198_v47, %v1197_v22  ;;  %1631 = vmatpush.bf16.msrb.mxu1 %v2805_v33  ;;  %v3134_v22 = vld [vmem:[%s3608_s21 + $0x284] sm:$0xf]  ;;  %v2798_v47 = vld [vmem:[%s3608_s21 + $0x288] sm:$0xf0]  ;;  %1647 = vmatpush.bf16.msrb.mxu2 %v2769_v53  ;;  %v2745_v21 = vor.u32 %v3120_v16, %v2742_v20  ;;  %v780_v38 = vadd.f32 %v3426_v26, %v753_v35 }
 0x2db   : > { %1321 = vmatmul.bf16.gmra.mxu2 %v1200_v50  ;;  %1340 = vmatmul.bf16.gmra.mxu3 %v1200_v50  ;;  %v2801_v50 = vor.u32 %v3134_v22, %v2798_v47 }
 0x2dc   : > { %1669 = vmatpush.bf16.msrb.mxu3 %v2809_v40  ;;  %1608 = vmatpush.bf16.msrb.mxu0 %v2773_v45  ;;  %v2732_v40 = vld [vmem:[%s3608_s21 + $0x200] sm:$0xf] }
 0x2dd   : > { %1632 = vmatpush.bf16.msrb.mxu1 %v2797_v46  ;;  %1648 = vmatpush.bf16.msrb.mxu2 %v2761_v56  ;;  %v2733_v44 = vor.u32 %v3119_v42, %v2732_v40  ;;  %v3164_v40 = vld [vmem:[%s3711_s25 + $0x174] sm:$0xf]  ;;  %v2941_v42 = vld [vmem:[%s3711_s25 + $0x178] sm:$0xf0] }
 0x2de   : > { %v2944_v35 = vor.u32 %v3164_v40, %v2941_v42  ;;  %v2883_v42 = vld [vmem:[%s3711_s25 + $0x100] sm:$0xf] }
 0x2e0   : > { %1670 = vmatpush.bf16.msrb.mxu3 %v2801_v50  ;;  %1609 = vmatpush.bf16.msrb.mxu0 %v2765_v48 }
 0x2e1   : > { %1649 = vmatpush.bf16.msrb.mxu2 %v2753_v3  ;;  %1894 = vmatpush.bf16.msra.mxu1 %v2944_v35 }
 0x2e4   : > { %1610 = vmatpush.bf16.msrb.mxu0 %v2757_v59  ;;  %3209 = vmatpush.bf16.msra.mxu3 %v2944_v35  ;;  %v3151_v35 = vld [vmem:[%s3711_s25 + $0x104] sm:$0xf0] }
 0x2e5   : > { %1650 = vmatpush.bf16.msrb.mxu2 %v2745_v21 }
 0x2e8   : > { %1611 = vmatpush.bf16.msrb.mxu0 %v2749_v15 }
 0x2e9   : > { %1651 = vmatpush.bf16.msrb.mxu2 %v2737_v17  ;;  %v2940_v17 = vor.u32 %v3165_v36, %v2939_v34 }
 0x2ec   : > { %1612 = vmatpush.bf16.msrb.mxu0 %v2741_v30 }
 0x2ed   : > { %3201 = vmatpush.bf16.msra.mxu2 %v2940_v17 }
 0x2f0   : > { %1613 = vmatpush.bf16.msrb.mxu0 %v2733_v44  ;;  %v2931_v44 = vld [vmem:[%s3711_s25 + $0x160] sm:$0xf] }
 0x2f4   : > { %1875 = vmatpush.bf16.msra.mxu0 %v2940_v17 }
 0x34e   : > { %v1317_v6 = vpop.f32.mrf.mxu2  ;;  %v1336_v31 = vpop.f32.mrf.mxu3 }
 0x34f   : > { %v1318_v5 = vadd.f32 %v1317_v6, %v4054_v2  ;;  %v1337_v33 = vadd.f32 %v1336_v31, %v1225_v29 }
 0x351   : > { %v4065_v0 = vadd.f32 %v1318_v5, %v779_v32  ;;  %v4074_v60 = vadd.f32 %v1337_v33, %v3871_v37  ;;  %v756_v37 = vadd.f32 %v3915_v28, %v4048_v61 }
 0x353   : > { %v1355_v22 = vpack.c.bf16 %v4074_v60, %v4074_v60  ;;  %v781_v53 = vadd.f32 %v3422_v25, %v756_v37  ;;  %v1359_v58 = vrot.slane %v4074_v60, 4  ;;  %v3161_v37 = vld [vmem:[%s3711_s25 + $0x154] sm:$0xf0] }
 0x355   : > { %v1392_v19 = vunpack.c.l.b16 %v1355_v22  ;;  %v2923_v22 = vld [vmem:[%s3711_s25 + $0x150] sm:$0xf] }
 0x356   : > { %v1319_v27 = vpop.f32.mrf.mxu2  ;;  %v1338_v8 = vpop.f32.mrf.mxu3 }
 0x357   : > { %v1320_v45 = vadd.f32 %v1319_v27, %v4054_v2  ;;  %v1339_v46 = vadd.f32 %v1338_v8, %v1225_v29  ;;  %v3163_v27 = vld [vmem:[%s3711_s25 + $0x164] sm:$0xf0]  ;;  %v3162_v8 = vld [vmem:[%s3711_s25 + $0x164] sm:$0xf] }
 0x359   : > { %v4080_v47 = vadd.f32 %v1320_v45, %v780_v38  ;;  %v4083_v10 = vadd.f32 %v1339_v46, %v3874_v41  ;;  %v2932_v38 = vor.u32 %v3163_v27, %v2931_v44  ;;  %v2933_v45 = vld [vmem:[%s3711_s25 + $0x168] sm:$0xf0]  ;;  %v3150_v44 = vld [vmem:[%s3711_s25 + $0x104] sm:$0xf]  ;;  %v2884_v27 = vor.u32 %v3151_v35, %v2883_v42 }
 0x35a   : > { %v2936_v46 = vor.u32 %v3162_v8, %v2933_v45  ;;  %v2885_v8 = vld [vmem:[%s3711_s25 + $0x108] sm:$0xf0] }
 0x35b   : > { %v1356_v50 = vpack.c.bf16 %v4083_v10, %v4083_v10  ;;  %v1360_v28 = vrot.slane %v4083_v10, 4  ;;  %1876 = vmatpush.bf16.msra.mxu0 %v2932_v38  ;;  %3202 = vmatpush.bf16.msra.mxu2 %v2932_v38  ;;  %v2888_v45 = vor.u32 %v3150_v44, %v2885_v8 }
 0x35c   : > { %1895 = vmatpush.bf16.msra.mxu1 %v2936_v46  ;;  %3210 = vmatpush.bf16.msra.mxu3 %v2936_v46 }
 0x35d   : > { %v1393_v39 = vunpack.c.l.b16 %v1356_v50  ;;  %v1366_v62 = vsel %vm1363_vm10, %v1359_v58, %v1360_v28  ;;  %v3160_v50 = vld [vmem:[%s3711_s25 + $0x154] sm:$0xf] }
 0x35e   : > { %v1322_v26 = vpop.f32.mrf.mxu2  ;;  %v1341_v52 = vpop.f32.mrf.mxu3  ;;  %v1373_v7 = vpack.c.bf16 %v1366_v62, %v1366_v62  ;;  %v3156_v62 = vld [vmem:[%s3711_s25 + $0x134] sm:$0xf] }
 0x35f   : > { %v1323_v54 = vadd.f32 %v1322_v26, %v4054_v2  ;;  %v1396_v48 = vpack.c.b16 %v1393_v39, %v1392_v19  ;;  %v1342_v23 = vadd.f32 %v1341_v52, %v1225_v29  ;;  %v2924_v19 = vor.u32 %v3161_v37, %v2923_v22  ;;  %v2925_v39 = vld [vmem:[%s3711_s25 + $0x158] sm:$0xf0] }
 0x360   : > { %v1381_v20 = vunpack.c.l.b16 %v1373_v7  ;;  %v2928_v26 = vor.u32 %v3160_v50, %v2925_v39  ;;  %v2727_v50 = vld [vmem:[%s3733_s29 + $0xa8] sm:$0xff] }
 0x361   : > { %v4091_v55 = vadd.f32 %v1323_v54, %v781_v53  ;;  %1633 = vmatmul.bf16.vlgmr.msrb.gmra.mxu1 %v1396_v48  ;;  %1671 = vmatmul.bf16.vlgmr.msrb.gmra.mxu3 %v1396_v48  ;;  %v4094_v41 = vadd.f32 %v1342_v23, %v3881_v18  ;;  %v2915_v53 = vld [vmem:[%s3711_s25 + $0x140] sm:$0xf]  ;;  %v3159_v54 = vld [vmem:[%s3711_s25 + $0x144] sm:$0xf0]  ;;  %v3158_v48 = vld [vmem:[%s3711_s25 + $0x144] sm:$0xf] }
 0x362   : > { %1877 = vmatpush.bf16.msra.mxu0 %v2924_v19  ;;  %3203 = vmatpush.bf16.msra.mxu2 %v2924_v19  ;;  %v2916_v23 = vor.u32 %v3159_v54, %v2915_v53 }
 0x363   : > { %v1357_v59 = vpack.c.bf16 %v4094_v41, %v4094_v41  ;;  %v1361_v9 = vrot.slane %v4094_v41, 4  ;;  %1896 = vmatpush.bf16.msra.mxu1 %v2928_v26  ;;  %3211 = vmatpush.bf16.msra.mxu3 %v2928_v26 }
 0x365   : > { %v1394_v1 = vunpack.c.l.b16 %v1357_v59  ;;  %v1365_v4 = vsel %vm1363_vm10, %v1360_v28, %v1361_v9  ;;  %v2917_v28 = vld [vmem:[%s3711_s25 + $0x148] sm:$0xf0]  ;;  %v3157_v59 = vld [vmem:[%s3711_s25 + $0x134] sm:$0xf0] }
 0x366   : > { %v1343_v56 = vpop.f32.mrf.mxu3  ;;  %v1370_v30 = vsel %vm204_vm5, %v1365_v4, 0.0  ;;  %v4132_v52 = vpop.f32.mrf.mxu2  ;;  %1878 = vmatpush.bf16.msra.mxu0 %v2916_v23  ;;  %3204 = vmatpush.bf16.msra.mxu2 %v2916_v23 }
 0x367   : > { %v1344_v57 = vadd.f32 %v1343_v56, %v1225_v29  ;;  %v1374_v31 = vpack.c.bf16 %v1370_v30, %v1370_v30  ;;  %v2920_v56 = vor.u32 %v3158_v48, %v2917_v28  ;;  %v3153_v30 = vld [vmem:[%s3711_s25 + $0x114] sm:$0xf0] }
 0x369   : > { %v4100_v25 = vadd.f32 %v1344_v57, %v3887_v49  ;;  %v1382_v5 = vunpack.c.l.b16 %v1374_v31  ;;  %1897 = vmatpush.bf16.msra.mxu1 %v2920_v56  ;;  %3212 = vmatpush.bf16.msra.mxu3 %v2920_v56  ;;  %v2725_v31 = vld [vmem:[%s3733_s29 + $0x98] sm:$0xff] }
 0x36b   : > { %v1362_v18 = vrot.slane %v4100_v25, 4  ;;  %v1358_v63 = vpack.c.bf16 %v4100_v25, %v4100_v25 }
 0x36d   : > { %v1395_v51 = vunpack.c.l.b16 %v1358_v63  ;;  %v1367_v3 = vsel %vm1363_vm10, %v1362_v18, %v1359_v58  ;;  %v1364_v29 = vsel %vm1363_vm10, %v1361_v9, %v1362_v18  ;;  %v2907_v58 = vld [vmem:[%s3711_s25 + $0x130] sm:$0xf]  ;;  %v2723_v18 = vld [vmem:[%s3733_s29 + $0x88] sm:$0xff] }
 0x36e   : > { %v1368_v49 = vsel %vm202_vm4, %v1367_v3, 0.0  ;;  %v1375_v6 = vpack.c.bf16 %v1364_v29, %v1364_v29  ;;  %v2908_v63 = vor.u32 %v3157_v59, %v2907_v58  ;;  %v2891_v29 = vld [vmem:[%s3711_s25 + $0x110] sm:$0xf]  ;;  %v2729_v59 = vld [vmem:[%s3733_s29 + $0xb8] sm:$0xff] }
 0x36f   : > { %v1397_v12 = vpack.c.b16 %v1395_v51, %v1394_v1  ;;  %v1372_v15 = vpack.c.bf16 %v1368_v49, %v1368_v49  ;;  %v2909_v1 = vld [vmem:[%s3711_s25 + $0x138] sm:$0xf0]  ;;  %v2899_v49 = vld [vmem:[%s3711_s25 + $0x120] sm:$0xf] }
 0x370   : > { %v1383_v32 = vunpack.c.l.b16 %v1375_v6  ;;  %v2912_v51 = vor.u32 %v3156_v62, %v2909_v1  ;;  %1879 = vmatpush.bf16.msra.mxu0 %v2908_v63  ;;  %3205 = vmatpush.bf16.msra.mxu2 %v2908_v63 }
 0x371   : > { %1638 = vmatmul.bf16.gmra.mxu1 %v1397_v12  ;;  %1676 = vmatmul.bf16.gmra.mxu3 %v1397_v12  ;;  %v1380_v16 = vunpack.c.l.b16 %v1372_v15  ;;  %v3155_v12 = vld [vmem:[%s3711_s25 + $0x124] sm:$0xf0]  ;;  %v3154_v15 = vld [vmem:[%s3711_s25 + $0x124] sm:$0xf] }
 0x372   : > { %v1385_v33 = vpack.c.b16 %v1383_v32, %v1382_v5  ;;  %1898 = vmatpush.bf16.msra.mxu1 %v2912_v51  ;;  %3213 = vmatpush.bf16.msra.mxu3 %v2912_v51  ;;  %v2892_v32 = vor.u32 %v3153_v30, %v2891_v29  ;;  %v3152_v5 = vld [vmem:[%s3711_s25 + $0x114] sm:$0xf] }
 0x373   : > { %v1384_v21 = vpack.c.b16 %v1381_v20, %v1380_v16  ;;  %v2900_v16 = vor.u32 %v3155_v12, %v2899_v49  ;;  %v2901_v20 = vld [vmem:[%s3711_s25 + $0x128] sm:$0xf0] }
 0x375   : > { %1614 = vmatmul.bf16.vlgmr.msrb.gmra.mxu0 %v1384_v21  ;;  %1652 = vmatmul.bf16.vlgmr.msrb.gmra.mxu2 %v1384_v21  ;;  %v2904_v21 = vor.u32 %v3154_v15, %v2901_v20 }
 0x376   : > { %1880 = vmatpush.bf16.msra.mxu0 %v2900_v16  ;;  %3206 = vmatpush.bf16.msra.mxu2 %v2900_v16 }
 0x377   : > { %1899 = vmatpush.bf16.msra.mxu1 %v2904_v21  ;;  %3214 = vmatpush.bf16.msra.mxu3 %v2904_v21 }
 0x37a   : > { %1881 = vmatpush.bf16.msra.mxu0 %v2892_v32  ;;  %3207 = vmatpush.bf16.msra.mxu2 %v2892_v32 }
 0x37e   : > { %1882 = vmatpush.bf16.msra.mxu0 %v2884_v27  ;;  %3208 = vmatpush.bf16.msra.mxu2 %v2884_v27 }
 0x385   : > { %1619 = vmatmul.bf16.gmra.mxu0 %v1385_v33  ;;  %1657 = vmatmul.bf16.gmra.mxu2 %v1385_v33  ;;  %v2893_v33 = vld [vmem:[%s3711_s25 + $0x118] sm:$0xf0] }
 0x386   : > { %v2896_v34 = vor.u32 %v3152_v5, %v2893_v33 }
 0x388   : > { %1900 = vmatpush.bf16.msra.mxu1 %v2896_v34  ;;  %3215 = vmatpush.bf16.msra.mxu3 %v2896_v34 }
 0x38c   : > { %1901 = vmatpush.bf16.msra.mxu1 %v2888_v45  ;;  %3216 = vmatpush.bf16.msra.mxu3 %v2888_v45 }
 0x3de   : > { %v1634_v19 = vpop.f32.mrf.mxu1 }
 0x3e4   : > { %v1672_v57 = vpop.f32.mrf.mxu3 }
 0x3e6   : > { %v1636_v1 = vpop.f32.mrf.mxu1 }
 0x3ec   : > { %v1674_v6 = vpop.f32.mrf.mxu3 }
 0x3f2   : > { %v1615_v40 = vpop.f32.mrf.mxu0 }
 0x3f4   : > { %v1677_v39 = vpop.f32.mrf.mxu3 }
 0x3f8   : > { %v1653_v3 = vpop.f32.mrf.mxu2 }
 0x3f9   : > { %v1654_v7 = vadd.f32 %v2723_v18, %v1653_v3  ;;  %v2724_v18 = vld [vmem:[%s3733_s29 + $0x90] sm:$0xff] }
 0x3fa   : > { %v1617_v54 = vpop.f32.mrf.mxu0 }
 0x3fb   : > { %v1673_v9 = vadd.f32 %v1672_v57, %v1654_v7  ;;  %v2722_v57 = vld [vmem:[%s3733_s29 + $0x80] sm:$0xff]  ;;  %v1618_v49 = vadd.f32 %v2724_v18, %v1617_v54 }
 0x3fc   : > { %v1616_v51 = vadd.f32 %v2722_v57, %v1615_v40  ;;  %v1679_v12 = vpop.f32.mrf.mxu3 }
 0x3fd   : > { %v2858_v4 = vmul.f32 -1.442695, %v1673_v9  ;;  %v1637_v30 = vadd.f32 %v1636_v1, %v1618_v49 }
 0x3fe   : > { %v1635_v9 = vadd.f32 %v1634_v19, %v1616_v51 }
 0x3ff   : > { %3354 = vpow2.f32 %v2858_v4 }
 0x400   : > { %v1655_v36 = vpop.f32.mrf.mxu2 }
 0x401   : > { %v1656_v17 = vadd.f32 %v2725_v31, %v1655_v36 }
 0x402   : > { %v1620_v21 = vpop.f32.mrf.mxu0 }
 0x403   : > { %v1675_v38 = vadd.f32 %v1674_v6, %v1656_v17  ;;  %v1639_v17 = vpop.f32.mrf.mxu1 }
 0x405   : > { %v3355_v46 = vpop.eup %3354  ;;  %v2859_v22 = vmul.f32 -1.442695, %v1675_v38 }
 0x406   : > { %v1698_v37 = vadd.f32 1.0, %v3355_v46  ;;  %v2726_v46 = vld [vmem:[%s3733_s29 + $0xa0] sm:$0xff] }
 0x407   : > { %3356 = vpow2.f32 %v2859_v22 }
 0x408   : > { %3358 = vrcp.f32 %v1698_v37  ;;  %v1658_v26 = vpop.f32.mrf.mxu2  ;;  %v1713_v5 = vand.u32 2147483648, %v1698_v37  ;;  %vm1707_vm12 = vweird.f32 %v1698_v37  ;;  %v1711_v34 = vand.u32 2147483647, %v1698_v37 }
 0x409   : > { %v1659_v53 = vadd.f32 %v2727_v50, %v1658_v26  ;;  %v2728_v26 = vld [vmem:[%s3733_s29 + $0xb0] sm:$0xff] }
 0x40a   : > { %v1714_v27 = vor.u32 1.1754944e-38, %v1713_v5  ;;  %vm1712_vm15 = vcmp.eq.f32.partialorder %v1711_v34, 8.507059e+37 }
 0x40b   : > { %v1678_v48 = vadd.f32 %v1677_v39, %v1659_v53  ;;  %v1622_v53 = vpop.f32.mrf.mxu0 }
 0x40d   : > { %v3357_v23 = vpop.eup %3356  ;;  %v2860_v28 = vmul.f32 -1.442695, %v1678_v48 }
 0x40e   : > { %v3359_v56 = vpop.eup %3358  ;;  %v1699_v58 = vadd.f32 1.0, %v3357_v23 }
 0x40f   : > { %v1703_v62 = vmul.f32 %v3359_v56, %v1698_v37  ;;  %3360 = vpow2.f32 %v2860_v28  ;;  %vm1708_vm11 = vweird.f32 %v3359_v56  ;;  %v1621_v28 = vadd.f32 %v2726_v46, %v1620_v21 }
 0x410   : > { %3362 = vrcp.f32 %v1699_v58  ;;  %v1660_v63 = vpop.f32.mrf.mxu2  ;;  %vm4163_vm13 = vmor %vm1707_vm12, %vm1708_vm11  ;;  %v1728_v40 = vand.u32 2147483648, %v1699_v58  ;;  %v1726_v44 = vand.u32 2147483647, %v1699_v58  ;;  %vm1722_vm6 = vweird.f32 %v1699_v58 }
 0x411   : > { %v1704_v3 = vsub.f32 1.0, %v1703_v62  ;;  %v1661_v7 = vadd.f32 %v2729_v59, %v1660_v63  ;;  %v1623_v59 = vadd.f32 %v2728_v26, %v1622_v53  ;;  %v1641_v63 = vpop.f32.mrf.mxu1  ;;  %v1640_v1 = vadd.f32 %v1639_v17, %v1621_v28 }
 0x412   : > { %v1729_v50 = vor.u32 1.1754944e-38, %v1728_v40  ;;  %vm1727_vm8 = vcmp.eq.f32.partialorder %v1726_v44, 8.507059e+37  ;;  %v758_v28 = vadd.f32 %v3925_v43, %v4048_v61  ;;  %v3173_v43 = vld [vmem:[%s4284_s7 + $0x38] sm:$0xff] (%p208_p0)  ;;  %v3172_v61 = vld [vmem:[%s4284_s7 + $0x30] sm:$0xff] (%p208_p0) }
 0x413   : > { %v1680_v15 = vadd.f32 %v1679_v12, %v1661_v7  ;;  %v1705_v16 = vmul.f32 %v3359_v56, %v1704_v3  ;;  %v1642_v3 = vadd.f32 %v1641_v63, %v1623_v59 }
 0x415   : > { %v3361_v20 = vpop.eup %3360  ;;  %v2861_v4 = vmul.f32 -1.442695, %v1680_v15  ;;  %v1706_v32 = vadd.f32 %v3359_v56, %v1705_v16 }
 0x416   : > { %v3363_v29 = vpop.eup %3362  ;;  %v4160_v6 = vadd.f32 1.0, %v3361_v20 }
 0x417   : > { %v1718_v31 = vmul.f32 %v3363_v29, %v1699_v58  ;;  %3364 = vpow2.f32 %v2861_v4  ;;  %v1710_v42 = vsel %vm4163_vm13, %v3359_v56, %v1706_v32  ;;  %vm1723_vm14 = vweird.f32 %v3363_v29 }
 0x418   : > { %3366 = vrcp.f32 %v4160_v6  ;;  %v1715_v37 = vsel %vm1712_vm15, %v1714_v27, %v1710_v42  ;;  %vm1724_vm7 = vmor %vm1722_vm6, %vm1723_vm14  ;;  %v1743_v12 = vand.u32 2147483648, %v4160_v6  ;;  %vm1737_vm10 = vweird.f32 %v4160_v6  ;;  %v2880_v42 = vld [vmem:[%s3852_s14 + $0x4] sm:$0x3] }
 0x419   : > { %3368 = vtanh.f32 %v1635_v9  ;;  %v1719_v33 = vsub.f32 1.0, %v1718_v31  ;;  %v1741_v16 = vand.u32 2147483647, %v4160_v6  ;;  %v1792_v44 = vperm.slane %v2880_v42, 1 }
 0x41a   : > { %3370 = vtanh.f32 %v1637_v30 }
 0x41b   : > { %v1720_v35 = vmul.f32 %v3363_v29, %v1719_v33  ;;  %vm1742_vm13 = vcmp.eq.f32.partialorder %v1741_v16, 8.507059e+37  ;;  %v3174_v16 = vld [vmem:[%s4286_s9] sm:$0xff] (%p208_p0) }
 0x41d   : > { %v3365_v8 = vpop.eup %3364  ;;  %v1721_v38 = vadd.f32 %v3363_v29, %v1720_v35  ;;  %v1791_v35 = vperm.slane %v2880_v42, 0 }
 0x41e   : > { %v3367_v45 = vpop.eup %3366  ;;  %v1701_v22 = vadd.f32 1.0, %v3365_v8 }
 0x41f   : > { %v3369_v19 = vpop.eup %3368  ;;  %v1733_v39 = vmul.f32 %v3367_v45, %v4160_v6  ;;  %v1725_v54 = vsel %vm1724_vm7, %v3363_v29, %v1721_v38  ;;  %vm1738_vm9 = vweird.f32 %v3367_v45  ;;  %v1744_v29 = vor.u32 1.1754944e-38, %v1743_v12  ;;  %v3176_v12 = vld [vmem:[%s4286_s9 + $0x10] sm:$0xff] (%p208_p0) }
 0x420   : > { %v3371_v48 = vpop.eup %3370  ;;  %3372 = vrcp.f32 %v1701_v22  ;;  %v1730_v23 = vsel %vm1727_vm8, %v1729_v50, %v1725_v54  ;;  %v1762_v57 = vmul.f32 %v3369_v19, %v1715_v37  ;;  %vm1739_vm11 = vmor %vm1737_vm10, %vm1738_vm9  ;;  %v1758_v20 = vand.u32 2147483648, %v1701_v22 }
 0x421   : > { %v1734_v56 = vsub.f32 1.0, %v1733_v39  ;;  %v1763_v58 = vmul.f32 %v3371_v48, %v1730_v23  ;;  %3374 = vtanh.f32 %v1640_v1  ;;  %v1756_v4 = vand.u32 2147483647, %v1701_v22 }
 0x422   : > { %3376 = vtanh.f32 %v1642_v3  ;;  %vm1752_vm14 = vweird.f32 %v1701_v22  ;;  %v1759_v32 = vor.u32 1.1754944e-38, %v1758_v20 }
 0x423   : > { %v1766_v62 = vpack.c.bf16 %v1763_v58, %v1762_v57  ;;  %v1735_v18 = vmul.f32 %v3367_v45, %v1734_v56  ;;  %vm1757_vm6 = vcmp.eq.f32.partialorder %v1756_v4, 8.507059e+37 }
 0x425   : > { %1883 = vmatmul.bf16.vlgmr.msra.gmra.mxu0 %v1766_v62  ;;  %1902 = vmatmul.bf16.vlgmr.msra.gmra.mxu1 %v1766_v62  ;;  %v1736_v49 = vadd.f32 %v3367_v45, %v1735_v18 }
 0x426   : > { %v3373_v51 = vpop.eup %3372  ;;  %1995 = vmatpush.bf16.msra.mxu0 (%p208_p0), %v3173_v43 }
 0x427   : > { %v1748_v7 = vmul.f32 %v3373_v51, %v1701_v22  ;;  %v1740_v9 = vsel %vm1739_vm11, %v3367_v45, %v1736_v49  ;;  %vm1753_vm12 = vweird.f32 %v3373_v51  ;;  %v3375_v5 = vpop.eup %3374  ;;  %v3177_v49 = vld [vmem:[%s4286_s9 + $0x18] sm:$0xff] (%p208_p0) }
 0x428   : > { %v1745_v31 = vsel %vm1742_vm13, %v1744_v29, %v1740_v9  ;;  %vm1754_vm15 = vmor %vm1752_vm14, %vm1753_vm12  ;;  %v3377_v34 = vpop.eup %3376  ;;  %v3378_v9 = vld [vmem:[%s4285_s8] ss:$0 sm:$0xff] (%p208_p0) }
 0x429   : > { %v1749_v15 = vsub.f32 1.0, %v1748_v7  ;;  %v1764_v36 = vmul.f32 %v3375_v5, %v1745_v31 }
 0x42a   :  { %1996 = vmatpush.bf16.msra.mxu0 (%p208_p0), %v3172_v61 }
 0x42b   : > { %v1750_v21 = vmul.f32 %v3373_v51, %v1749_v15  ;;  %v3175_v15 = vld [vmem:[%s4286_s9 + $0x8] sm:$0xff] (%p208_p0) }
 0x42d   : > { %v1751_v30 = vadd.f32 %v3373_v51, %v1750_v21 }
 0x42e   :  { %1997 = vmatpush.bf16.msra.mxu0 (%p208_p0), %v3171_v11 }
 0x42f   : > { %v1755_v33 = vsel %vm1754_vm15, %v3373_v51, %v1751_v30  ;;  %v3166_v51 = vld [vmem:[%s4284_s7] sm:$0xff] (%p208_p0) }
 0x430   : > { %v1760_v6 = vsel %vm1757_vm6, %v1759_v32, %v1755_v33 }
 0x431   : > { %v1765_v40 = vmul.f32 %v3377_v34, %v1760_v6 }
 0x432   :  { %1998 = vmatpush.bf16.msra.mxu0 (%p208_p0), %v3170_v14 }
 0x433   : > { %v1767_v17 = vpack.c.bf16 %v1765_v40, %v1764_v36 }
 0x435   : > { %1888 = vmatmul.bf16.vlgmr.msra.gmra.mxu2 %v1767_v17  ;;  %1907 = vmatmul.bf16.vlgmr.msra.gmra.mxu3 %v1767_v17 }
 0x436   :  { %3217 = vmatpush.bf16.msra.mxu2 (%p208_p0), %v3173_v43 }
 0x43a   :  { %3218 = vmatpush.bf16.msra.mxu2 (%p208_p0), %v3172_v61 }
 0x43e   :  { %3219 = vmatpush.bf16.msra.mxu2 (%p208_p0), %v3171_v11 }
 0x442   :  { %3220 = vmatpush.bf16.msra.mxu2 (%p208_p0), %v3170_v14 }
 0x4a2   : > { %v1884_v27 = vpop.f32.mrf.mxu0  ;;  %v1903_v8 = vpop.f32.mrf.mxu1 }
 0x4a3   : > { %v1885_v38 = vadd.f32 %v1884_v27, %v1791_v35  ;;  %v1904_v45 = vadd.f32 %v1903_v8, %v1792_v44 }
 0x4a5   : > { %v4177_v27 = vadd.f32 %v1885_v38, %v4065_v0   ;;  %v1917_v18 = vadd.f32 %v1904_v45, %v4074_v60   ;;  %v1325_v60 = vadd.f32 %v4132_v52, %v4054_v2  ;;  %v3181_v2 = vld [vmem:[%s4286_s9 + $0x38] sm:$0xff] (%p208_p0)  ;;  %v3167_v52 = vld [vmem:[%s4284_s7 + $0x8] sm:$0xff] (%p208_p0) }
 0x4a6   :  { %2088 = vmatpush.bf16.msra.mxu1 (%p208_p0), %v3181_v2  ;;  %3225 = vmatpush.bf16.msra.mxu3 (%p208_p0), %v3181_v2 }
 0x4a7   : > { %v4297_v46 = vmov %v4177_v27 }
 0x4a8   : > { %v4302_v27 = vmov %v4297_v46  ;;  %v1921_v62 = vmax.f32 (%p208_p0), %v4297_v46, 0.0 }
 0x4aa   : > { %v1886_v22 = vpop.f32.mrf.mxu0  ;;  %v1905_v37 = vpop.f32.mrf.mxu1 }
 0x4ab   : > { %v1887_v50 = vadd.f32 %v1886_v22, %v1791_v35  ;;  %v1906_v19 = vadd.f32 %v1905_v37, %v1792_v44 }
 0x4ad   : > { %v4181_v26 = vadd.f32 %v1887_v50, %v4080_v47   ;;  %v1918_v22 = vadd.f32 %v1906_v19, %v4083_v10   ;;  %v782_v47 = vadd.f32 %v3418_v24, %v758_v28 }
 0x4af   : > { %v4298_v39 = vmov %v4181_v26  ;;  %v1349_v10 = vadd.f32 %v1325_v60, %v782_v47 }
 0x4b0   :  { %v1922_v18 = vmax.f32 (%p208_p0), %v4298_v39, 0.0 }
 0x4b2   :  { %v1941_v3 = vpack.c.bf16 (%p208_p0), %v1922_v18, %v1921_v62 }
 0x4b8   : > { %v1889_v53 = vpop.f32.mrf.mxu2  ;;  %v1908_v54 = vpop.f32.mrf.mxu3 }
 0x4b9   : > { %v1890_v48 = vadd.f32 %v1889_v53, %v1791_v35  ;;  %v1909_v23 = vadd.f32 %v1908_v54, %v1792_v44 }
 0x4bb   : > { %v4187_v0 = vadd.f32 %v1890_v48, %v4091_v55   ;;  %v1919_v19 = vadd.f32 %v1909_v23, %v4094_v41   ;;  %v3180_v55 = vld [vmem:[%s4286_s9 + $0x30] sm:$0xff] (%p208_p0)  ;;  %v3169_v41 = vld [vmem:[%s4284_s7 + $0x18] sm:$0xff] (%p208_p0) }
 0x4bc   :  { %2089 = vmatpush.bf16.msra.mxu1 (%p208_p0), %v3180_v55  ;;  %3226 = vmatpush.bf16.msra.mxu3 (%p208_p0), %v3180_v55 }
 0x4bd   :  { %1999 = vmatpush.bf16.msra.mxu0 (%p208_p0), %v3169_v41  ;;  %3221 = vmatpush.bf16.msra.mxu2 (%p208_p0), %v3169_v41  ;;  %v1923_v63 = vmax.f32 (%p208_p0), %v4187_v0, 0.0 }
 0x4c0   : > { %v1891_v26 = vpop.f32.mrf.mxu2  ;;  %v1910_v56 = vpop.f32.mrf.mxu3  ;;  %2090 = vmatpush.bf16.msra.mxu1 (%p208_p0), %v3179_v13  ;;  %3227 = vmatpush.bf16.msra.mxu3 (%p208_p0), %v3179_v13 }
 0x4c1   : > { %v1892_v57 = vadd.f32 %v1891_v26, %v1791_v35  ;;  %v1911_v58 = vadd.f32 %v1910_v56, %v1792_v44  ;;  %v4301_v26 = vmov %v4298_v39  ;;  %210 = sbr.rel (!%p208_p0) target bundleno = 168 (0xa8), region = 83  ;;  %v3379_v35 = vld [vmem:[%s4287_s10] ss:$0 sm:$0xff] (%p208_p0) }
 0x4c3   : > { %v1916_v59 = vadd.f32 %v1892_v57, %v1349_v10   ;;  %v1920_v23 = vadd.f32 %v1911_v58, %v4100_v25   ;;  %v4300_v25 = vmov %v4187_v0 }
 0x4c4   :  { %v3168_v25 = vld [vmem:[%s4284_s7 + $0x10] sm:$0xff] (%p208_p0) }
 0x4c5   : > { %v4299_v24 = vmov %v1916_v59  ;;  %2000 = vmatpush.bf16.msra.mxu0 (%p208_p0), %v3168_v25  ;;  %3222 = vmatpush.bf16.msra.mxu2 (%p208_p0), %v3168_v25  ;;  %v1924_v1 = vmax.f32 (%p208_p0), %v1916_v59, 0.0 }
 0x4c6   :  { %v3178_v24 = vld [vmem:[%s4286_s9 + $0x20] sm:$0xff] }
 0x4c7   :  { %2091 = vmatpush.bf16.msra.mxu1 %v3178_v24  ;;  %3228 = vmatpush.bf16.msra.mxu3 %v3178_v24  ;;  %v1942_v7 = vpack.c.bf16 %v1924_v1, %v1923_v63 }
 0x4c9   :  { %2001 = vmatpush.bf16.msra.mxu0 %v3167_v52  ;;  %3223 = vmatpush.bf16.msra.mxu2 %v3167_v52 }
 0x4cb   :  { %2092 = vmatpush.bf16.msra.mxu1 %v3177_v49  ;;  %3229 = vmatpush.bf16.msra.mxu3 %v3177_v49 }
 0x4cd   :  { %2002 = vmatpush.bf16.msra.mxu0 %v3166_v51  ;;  %3224 = vmatpush.bf16.msra.mxu2 %v3166_v51 }
 0x4cf   :  { %2093 = vmatpush.bf16.msra.mxu1 %v3176_v12  ;;  %3230 = vmatpush.bf16.msra.mxu3 %v3176_v12 }
 0x4d0   :  { %2003 = vmatmul.bf16.vlgmr.msra.gmra.mxu0 %v1941_v3  ;;  %2008 = vmatmul.bf16.vlgmr.msra.gmra.mxu2 %v1942_v7 }
 0x4d3   :  { %2094 = vmatpush.bf16.msra.mxu1 %v3175_v15  ;;  %3231 = vmatpush.bf16.msra.mxu3 %v3175_v15 }
 0x4d7   :  { %2095 = vmatpush.bf16.msra.mxu1 %v3174_v16  ;;  %3232 = vmatpush.bf16.msra.mxu3 %v3174_v16 }
 0x54d   :  { %v2004_v20 = vpop.f32.mrf.mxu0 }
 0x54e   :  { %v2005_v21 = vadd.f32 %v3378_v9, %v2004_v20 }
 0x550   :  { %v2014_v30 = vmax.f32 %v2005_v21, 0.0 }
 0x553   :  { %v2009_v4 = vpop.f32.mrf.mxu2 }
 0x554   :  { %v2010_v5 = vadd.f32 %v3378_v9, %v2009_v4 }
 0x555   :  { %v2006_v29 = vpop.f32.mrf.mxu0 }
 0x556   :  { %v2007_v31 = vadd.f32 %v3378_v9, %v2006_v29  ;;  %v2016_v36 = vmax.f32 %v2010_v5, 0.0 }
 0x558   :  { %v2015_v32 = vmax.f32 %v2007_v31, 0.0 }
 0x55a   :  { %v2034_v33 = vpack.c.bf16 %v2015_v32, %v2014_v30 }
 0x55b   :  { %v2011_v34 = vpop.f32.mrf.mxu2 }
 0x55c   :  { %v2012_v6 = vadd.f32 %v3378_v9, %v2011_v34  ;;  %2096 = vmatmul.bf16.vlgmr.msra.gmra.mxu1 %v2034_v33 }
 0x55e   :  { %v2017_v40 = vmax.f32 %v2012_v6, 0.0 }
 0x560   :  { %v2035_v17 = vpack.c.bf16 %v2017_v40, %v2016_v36 }
 0x562   :  { %2101 = vmatmul.bf16.vlgmr.msra.gmra.mxu3 %v2035_v17 }
 0x5d9   :  { %v2097_v42 = vpop.f32.mrf.mxu1 }
 0x5da   :  { %v2098_v27 = vadd.f32 %v3379_v35, %v2097_v42 }
 0x5e1   :  { %v2099_v44 = vpop.f32.mrf.mxu1 }
 0x5e2   :  { %v2100_v8 = vadd.f32 %v3379_v35, %v2099_v44 }
 0x5e4   :  { %v3185_v38 = vpack.c.bf16 %v2100_v8, %v2098_v27 }
 0x5e5   :  { %v2102_v45 = vpop.f32.mrf.mxu3 }
 0x5e6   :  { %3186 = vst [vmem:[%s4288_s11] sm:$0xff] %v3185_v38   ;;  %v2103_v22 = vadd.f32 %v3379_v35, %v2102_v45 }
 0x5ed   :  { %v2104_v46 = vpop.f32.mrf.mxu3 }
 0x5ee   :  { %v2105_v37 = vadd.f32 %v3379_v35, %v2104_v46 }
 0x5f0   :  { %v3190_v50 = vpack.c.bf16 %v2105_v37, %v2103_v22 }
 0x5f2   :  { %3192 = vst [vmem:[%s4288_s11 + $0x8] sm:$0xff] %v3190_v50  }

</bundles_post_ra>
